<compile_context>
chip_gen: v5e
topology: v5e:2x2
jax: 0.10.0
libtpu: 0.0.40
codegen_flags: <defaults>
</compile_context>

<pallas_src>
import functools
import math

import jax
import jax.numpy as jnp
from jax import lax
from jax.experimental import pallas as pl
from jax.experimental.pallas import tpu as pltpu

BN_EPS = 1e-5
LANE = 128
SUBLANE = 8


def _round_up(x, m):
    return (x + m - 1) // m * m


# ----------------------------------------------------------------------------
# Pass 1: folded 7x7 conv on one halo row-band (7 accumulated MXU matmuls,
#         one per dy tap) + bias, plus per-band partial BatchNorm statistics.
# ----------------------------------------------------------------------------
def _conv_stats_kernel(cols_ref, w_ref, b_ref,
                       out_ref, psum_ref, psumsq_ref,
                       *, tile_h, width, height, n_h_tiles):
    # cols_ref : ((tile_h+6)*W, K7p)   bf16  dx-expanded patches, halo row-band
    # w_ref    : (7, K7p, Cout_pad)    bf16  per-dy folded weight (grid-resident)
    # b_ref    : (1, Cout_pad)         f32   folded bias          (grid-resident)
    # out_ref  : (tile_h*W, Cout_pad)  bf16  conv + bias for this band
    # psum_ref / psumsq_ref : (8, Cout_pad) f32  per-sublane partial sums
    band_px = tile_h * width
    cout_pad = out_ref.shape[-1]

    acc = jnp.zeros((band_px, cout_pad), jnp.float32)
    for dy in range(7):                       # static unroll: 7 MXU matmuls
        lhs = cols_ref[pl.ds(dy * width, band_px), :]
        acc = acc + jnp.dot(lhs, w_ref[dy], preferred_element_type=jnp.float32)
    acc = acc + b_ref[...]

    if height % tile_h != 0:
        # Rows past the true image height exist only in the last band of each
        # image; zero them so they do not pollute the batch statistics.
        band = pl.program_id(0) % n_h_tiles
        h = (band * tile_h
             + lax.broadcasted_iota(jnp.int32, (band_px, 1), 0) // width)
        acc = jnp.where(h < height, acc, 0.0)

    # Statistics come from the f32 accumulator; the HBM intermediate is bf16.
    out_ref[...] = acc.astype(out_ref.dtype)

    # Per-sublane partials: every psum row is a genuine partial sum, the
    # wrapper just sums all of them (no XLU reduce-to-one-row, no broadcast).
    acc3 = acc.reshape(band_px // SUBLANE, SUBLANE, cout_pad)
    psum_ref[...] = jnp.sum(acc3, axis=0)
    psumsq_ref[...] = jnp.sum(acc3 * acc3, axis=0)


# ----------------------------------------------------------------------------
# Pass 2: BatchNorm apply (pre-folded per-channel scale/shift) + ReLU.
# ----------------------------------------------------------------------------
def _bn_relu_kernel(y_ref, scale_ref, shift_ref, o_ref):
    y = y_ref[...].astype(jnp.float32)
    o_ref[...] = jnp.maximum(y * scale_ref[...] + shift_ref[...], 0.0)


# ----------------------------------------------------------------------------
# Wrapper: weight fold, dx-expansion + halo banding, pallas_call plumbing.
# ----------------------------------------------------------------------------
def multiscale_conv(x_nchw, params):
    """Forward pass matching MultiScaleConv.forward.  x_nchw: (N, Cin, H, W)."""
    N, Cin, H, W = x_nchw.shape
    Cout = params["w3"].shape[-1]
    cout_pad = _round_up(Cout, LANE)   # 128-lane output; 256 only pays off once
    k7 = 7 * Cin                       # compute-bound (we are HBM-bound here).
    k7pad = _round_up(k7, SUBLANE)

    # --- fold 3x3 + 5x5 + 7x7 into a single 7x7 conv (exact) ----------------
    w3p = jnp.pad(params["w3"], ((2, 2), (2, 2), (0, 0), (0, 0)))
    w5p = jnp.pad(params["w5"], ((1, 1), (1, 1), (0, 0), (0, 0)))
    w_comb = (w3p + w5p + params["w7"]) / 3.0                  # (7,7,Cin,Cout)
    w_dy = w_comb.reshape(7, k7, Cout)                         # row = dx*Cin+c
    w_dy = jnp.pad(w_dy, ((0, 0), (0, k7pad - k7), (0, cout_pad - Cout)))
    w_dy = w_dy.astype(jnp.bfloat16)
    b_comb = (params["b1"] + params["b2"] + params["b3"]) / 3.0
    b_comb = jnp.pad(b_comb, (0, cout_pad - Cout)).reshape(1, cout_pad)
    b_comb = b_comb.astype(jnp.float32)

    # --- tile sizing from a ~4 MiB VMEM block budget (not a fixed 256 rows) --
    row_bytes = 2 * max(k7pad, LANE) + 2 * cout_pad   # bf16 cols (lane-padded) + bf16 out
    target_px = max(256, min(4096, (4 << 20) // row_bytes))
    g = SUBLANE // math.gcd(W, SUBLANE)               # make tile_h*W % 8 == 0
    tile_h = max(1, min(target_px // W, H))
    tile_h = min(_round_up(tile_h, g), _round_up(H, g))
    n_h_tiles = pl.cdiv(H, tile_h)
    h_pad = n_h_tiles * tile_h
    n_bands = N * n_h_tiles                           # >= 2 keeps v7x's 2 TCs busy
    band_px = tile_h * W
    band_px_halo = (tile_h + 6) * W

    # --- along-width (dx) patch expansion in XLA; dy taps handled in-kernel --
    # TODO(synk): for Cin >= ~32 (so 7*Cin >= 128 lanes) the dx expansion can
    # also move on-chip from a raw (tile_h+6, W+6, Cin) halo tile; at Cin=4 the
    # stride-4 lane-window assembly costs more relayout than the ~7x HBM
    # expansion it removes, so it stays in XLA here (vs ~49x previously).
    x_nhwc = jnp.transpose(x_nchw, (0, 2, 3, 1)).astype(jnp.bfloat16)
    xpw = jnp.pad(x_nhwc, ((0, 0), (0, 0), (3, 3), (0, 0)))      # W-halo
    cols_w = jnp.concatenate([xpw[:, :, dx:dx + W, :] for dx in range(7)],
                             axis=-1)                            # (N,H,W,7Cin)
    if k7pad != k7:
        cols_w = jnp.pad(cols_w, ((0, 0), (0, 0), (0, 0), (0, k7pad - k7)))
    cols_w = jnp.pad(cols_w, ((0, 0), (3, h_pad - H + 3), (0, 0), (0, 0)))
    # Overlapping halo row-bands, materialized (~1.1-1.4x dup) so pass 1 uses
    # plain blocked indexing with full-extent minor dims.
    bands = jnp.stack(
        [cols_w[:, t * tile_h: t * tile_h + tile_h + 6]
         for t in range(n_h_tiles)], axis=1)         # (N, T, tile_h+6, W, K7p)
    cols = bands.reshape(n_bands, band_px_halo, k7pad)

    cparams = pltpu.CompilerParams(
        dimension_semantics=("parallel",),           # bands are independent
        vmem_limit_bytes=32 * 1024 * 1024)

    # ---- pass 1: folded conv (bf16 intermediate) + per-band BN partials -----
    # NOTE: pipeline_mode=pl.Buffered(3) on the cols spec is a cheap follow-up
    # if profiling still shows exposed DMA after the bigger tiles.
    flops1 = 2 * n_bands * band_px * 7 * k7pad * cout_pad
    bytes1 = (cols.size * 2 + w_dy.size * 2 + b_comb.size * 4
              + n_bands * band_px * cout_pad * 2
              + 2 * n_bands * 8 * cout_pad * 4)
    conv_bf16, psum, psumsq = pl.pallas_call(
        functools.partial(_conv_stats_kernel, tile_h=tile_h, width=W,
                          height=H, n_h_tiles=n_h_tiles),
        out_shape=(
            jax.ShapeDtypeStruct((n_bands, band_px, cout_pad), jnp.bfloat16),
            jax.ShapeDtypeStruct((n_bands, 8, cout_pad), jnp.float32),
            jax.ShapeDtypeStruct((n_bands, 8, cout_pad), jnp.float32),
        ),
        grid=(n_bands,),
        in_specs=[
            pl.BlockSpec((None, band_px_halo, k7pad), lambda i: (i, 0, 0)),
            pl.BlockSpec((7, k7pad, cout_pad), lambda i: (0, 0, 0)),  # resident
            pl.BlockSpec((1, cout_pad), lambda i: (0, 0)),            # resident
        ],
        out_specs=(
            pl.BlockSpec((None, band_px, cout_pad), lambda i: (i, 0, 0)),
            pl.BlockSpec((None, 8, cout_pad), lambda i: (i, 0, 0)),
            pl.BlockSpec((None, 8, cout_pad), lambda i: (i, 0, 0)),
        ),
        compiler_params=cparams,
        cost_estimate=pl.CostEstimate(flops=flops1, transcendentals=0,
                                      bytes_accessed=bytes1),
    )(cols, w_dy, b_comb)

    # ---- finalize batch statistics (tiny O(Cout) f32 work, in XLA) ---------
    m_valid = N * H * W
    tot = jnp.sum(psum, axis=(0, 1))
    totsq = jnp.sum(psumsq, axis=(0, 1))
    mean = tot / m_valid
    # Single-pass E[x^2] - mean^2 with f32 accumulators; clamp tiny negatives
    # from cancellation (only relevant at very large M).
    var = jnp.maximum(totsq / m_valid - mean * mean, 0.0)
    inv = lax.rsqrt(var + BN_EPS)
    gamma = jnp.pad(params["gamma"], (0, cout_pad - Cout))
    beta = jnp.pad(params["beta"], (0, cout_pad - Cout))
    scale = (gamma * inv).reshape(1, cout_pad).astype(jnp.float32)
    shift = (beta - mean * gamma * inv).reshape(1, cout_pad).astype(jnp.float32)

    # ---- pass 2: BN apply + ReLU, tiled over the same bands -----------------
    flops2 = 2 * n_bands * band_px * cout_pad
    bytes2 = n_bands * band_px * cout_pad * (2 + 4) + 2 * cout_pad * 4
    out_flat = pl.pallas_call(
        _bn_relu_kernel,
        out_shape=jax.ShapeDtypeStruct((n_bands, band_px, cout_pad),
                                       jnp.float32),
        grid=(n_bands,),
        in_specs=[
            pl.BlockSpec((None, band_px, cout_pad), lambda i: (i, 0, 0)),
            pl.BlockSpec((1, cout_pad), lambda i: (0, 0)),
            pl.BlockSpec((1, cout_pad), lambda i: (0, 0)),
        ],
        out_specs=pl.BlockSpec((None, band_px, cout_pad), lambda i: (i, 0, 0)),
        compiler_params=cparams,
        cost_estimate=pl.CostEstimate(flops=flops2, transcendentals=0,
                                      bytes_accessed=bytes2),
    )(conv_bf16, scale, shift)

    out = out_flat.reshape(N, h_pad, W, cout_pad)[:, :H, :, :Cout]
    # TODO(synk): the NHWC->NCHW epilogue transpose is one extra (small,
    # channel-compact) HBM pass; return NHWC directly if the caller allows it.
    return jnp.transpose(out, (0, 3, 1, 2))                     # back to NCHW


# ----------------------------------------------------------------------------
# Pure-JAX reference (three separate f32 convs -> also validates the fold)
# ----------------------------------------------------------------------------
def _reference(x_nchw, params):
    x = jnp.transpose(x_nchw, (0, 2, 3, 1)).astype(jnp.float32)   # NHWC

    def conv(w_hwio, b, pad):
        y = lax.conv_general_dilated(
            x, w_hwio, window_strides=(1, 1),
            padding=[(pad, pad), (pad, pad)],
            dimension_numbers=("NHWC", "HWIO", "NHWC"))
        return y + b

    l1 = conv(params["w3"], params["b1"], 1)
    l2 = conv(params["w5"], params["b2"], 2)
    l3 = conv(params["w7"], params["b3"], 3)
    out = (l1 + l2 + l3) / 3.0
    mean = jnp.mean(out, axis=(0, 1, 2), keepdims=True)
    var = jnp.mean((out - mean) ** 2, axis=(0, 1, 2), keepdims=True)
    bn = (out - mean) * lax.rsqrt(var + BN_EPS) * params["gamma"] + params["beta"]
    ac = jnp.maximum(bn, 0.0)
    return jnp.transpose(ac, (0, 3, 1, 2))


# ----------------------------------------------------------------------------
def init_params(key, in_ch, out_ch):
    k3, k5, k7, kb1, kb2, kb3 = jax.random.split(key, 6)
    return {
        "w3": 0.1 * jax.random.normal(k3, (3, 3, in_ch, out_ch), jnp.float32),
        "w5": 0.1 * jax.random.normal(k5, (5, 5, in_ch, out_ch), jnp.float32),
        "w7": 0.1 * jax.random.normal(k7, (7, 7, in_ch, out_ch), jnp.float32),
        "b1": 0.1 * jax.random.normal(kb1, (out_ch,), jnp.float32),
        "b2": 0.1 * jax.random.normal(kb2, (out_ch,), jnp.float32),
        "b3": 0.1 * jax.random.normal(kb3, (out_ch,), jnp.float32),
        "gamma": jnp.ones((out_ch,), jnp.float32),   # BatchNorm2d defaults
        "beta": jnp.zeros((out_ch,), jnp.float32),
    }


if __name__ == "__main__":
    N, Cin, Cout, H, W = 2, 4, 8, 16, 16
    key = jax.random.PRNGKey(0)
    kx, kp = jax.random.split(key)
    x = jax.random.normal(kx, (N, Cin, H, W), jnp.float32)
    params = init_params(kp, Cin, Cout)

    out = jax.block_until_ready(multiscale_conv(x, params))
    ref = jax.block_until_ready(_reference(x, params))

    assert out.shape == (N, Cout, H, W), out.shape
    # Tolerance sized for bf16 MXU inputs + the bf16 conv intermediate
    # (expected max error ~1e-2 after the unit-variance BatchNorm); BN
    # statistics and all accumulation are f32.
    err = float(jnp.max(jnp.abs(out - ref)))
    assert err < 3e-2, err

    print("KERNEL_OK")
</pallas_src>

<mosaic_0001>
module attributes {stable_mosaic.version = 11 : i64} {
  func.func @_conv_stats_kernel(%arg0: i32, %arg1: memref<1x352x32xbf16, #tpu.memory_space<vmem>>, %arg2: memref<7x32x128xbf16, #tpu.memory_space<vmem>>, %arg3: memref<1x128xf32, #tpu.memory_space<vmem>>, %arg4: memref<1x256x128xbf16, #tpu.memory_space<vmem>>, %arg5: memref<1x8x128xf32, #tpu.memory_space<vmem>>, %arg6: memref<1x8x128xf32, #tpu.memory_space<vmem>>) attributes {dimension_semantics = [#tpu.dimension_semantics<parallel>], iteration_bounds = array<i64: 2>, scalar_prefetch = 0 : i64, scratch_operands = 0 : i64, tpu.core_type = #tpu.core_type<tc>, window_params = [{transform_indices = @transform_0, window_bounds = array<i64: 1, 352, 32>}, {pipeline_mode = #tpu.pipeline_mode<synchronous>, transform_indices = @transform_1, window_bounds = array<i64: 7, 32, 128>}, {pipeline_mode = #tpu.pipeline_mode<synchronous>, transform_indices = @transform_2, window_bounds = array<i64: 1, 128>}, {transform_indices = @transform_3, window_bounds = array<i64: 1, 256, 128>}, {transform_indices = @transform_4, window_bounds = array<i64: 1, 8, 128>}, {transform_indices = @transform_5, window_bounds = array<i64: 1, 8, 128>}]} {
    %cst = arith.constant 0.000000e+00 : f32
    %0 = vector.broadcast %cst : f32 to vector<256x128xf32>
    %c0 = arith.constant 0 : index
    %c0_0 = arith.constant 0 : index
    %c0_1 = arith.constant 0 : index
    %1 = vector.load %arg1[%c0, %c0_0, %c0_1] : memref<1x352x32xbf16, #tpu.memory_space<vmem>>, vector<1x256x32xbf16>
    %2 = vector.shape_cast %1 : vector<1x256x32xbf16> to vector<256x32xbf16>
    %c0_2 = arith.constant 0 : index
    %c0_3 = arith.constant 0 : index
    %c0_4 = arith.constant 0 : index
    %3 = vector.load %arg2[%c0_2, %c0_3, %c0_4] : memref<7x32x128xbf16, #tpu.memory_space<vmem>>, vector<1x32x128xbf16>
    %4 = vector.shape_cast %3 : vector<1x32x128xbf16> to vector<32x128xbf16>
    %cst_5 = arith.constant dense<0.000000e+00> : vector<256x128xf32>
    %5 = tpu.matmul %2, %4, %cst_5 {dimension_numbers = #tpu.dot_dimension_numbers<[1], [0], [0], [1], [0, 0, 1, 1], [], []>} : vector<256x32xbf16>, vector<32x128xbf16>, vector<256x128xf32> -> vector<256x128xf32>
    %6 = arith.addf %0, %5 : vector<256x128xf32>
    %c0_6 = arith.constant 0 : index
    %c16 = arith.constant 16 : index
    %c0_7 = arith.constant 0 : index
    %7 = vector.load %arg1[%c0_6, %c16, %c0_7] : memref<1x352x32xbf16, #tpu.memory_space<vmem>>, vector<1x256x32xbf16>
    %8 = vector.shape_cast %7 : vector<1x256x32xbf16> to vector<256x32xbf16>
    %c1 = arith.constant 1 : index
    %c0_8 = arith.constant 0 : index
    %c0_9 = arith.constant 0 : index
    %9 = vector.load %arg2[%c1, %c0_8, %c0_9] : memref<7x32x128xbf16, #tpu.memory_space<vmem>>, vector<1x32x128xbf16>
    %10 = vector.shape_cast %9 : vector<1x32x128xbf16> to vector<32x128xbf16>
    %cst_10 = arith.constant dense<0.000000e+00> : vector<256x128xf32>
    %11 = tpu.matmul %8, %10, %cst_10 {dimension_numbers = #tpu.dot_dimension_numbers<[1], [0], [0], [1], [0, 0, 1, 1], [], []>} : vector<256x32xbf16>, vector<32x128xbf16>, vector<256x128xf32> -> vector<256x128xf32>
    %12 = arith.addf %6, %11 : vector<256x128xf32>
    %c0_11 = arith.constant 0 : index
    %c32 = arith.constant 32 : index
    %c0_12 = arith.constant 0 : index
    %13 = vector.load %arg1[%c0_11, %c32, %c0_12] : memref<1x352x32xbf16, #tpu.memory_space<vmem>>, vector<1x256x32xbf16>
    %14 = vector.shape_cast %13 : vector<1x256x32xbf16> to vector<256x32xbf16>
    %c2 = arith.constant 2 : index
    %c0_13 = arith.constant 0 : index
    %c0_14 = arith.constant 0 : index
    %15 = vector.load %arg2[%c2, %c0_13, %c0_14] : memref<7x32x128xbf16, #tpu.memory_space<vmem>>, vector<1x32x128xbf16>
    %16 = vector.shape_cast %15 : vector<1x32x128xbf16> to vector<32x128xbf16>
    %cst_15 = arith.constant dense<0.000000e+00> : vector<256x128xf32>
    %17 = tpu.matmul %14, %16, %cst_15 {dimension_numbers = #tpu.dot_dimension_numbers<[1], [0], [0], [1], [0, 0, 1, 1], [], []>} : vector<256x32xbf16>, vector<32x128xbf16>, vector<256x128xf32> -> vector<256x128xf32>
    %18 = arith.addf %12, %17 : vector<256x128xf32>
    %c0_16 = arith.constant 0 : index
    %c48 = arith.constant 48 : index
    %c0_17 = arith.constant 0 : index
    %19 = vector.load %arg1[%c0_16, %c48, %c0_17] : memref<1x352x32xbf16, #tpu.memory_space<vmem>>, vector<1x256x32xbf16>
    %20 = vector.shape_cast %19 : vector<1x256x32xbf16> to vector<256x32xbf16>
    %c3 = arith.constant 3 : index
    %c0_18 = arith.constant 0 : index
    %c0_19 = arith.constant 0 : index
    %21 = vector.load %arg2[%c3, %c0_18, %c0_19] : memref<7x32x128xbf16, #tpu.memory_space<vmem>>, vector<1x32x128xbf16>
    %22 = vector.shape_cast %21 : vector<1x32x128xbf16> to vector<32x128xbf16>
    %cst_20 = arith.constant dense<0.000000e+00> : vector<256x128xf32>
    %23 = tpu.matmul %20, %22, %cst_20 {dimension_numbers = #tpu.dot_dimension_numbers<[1], [0], [0], [1], [0, 0, 1, 1], [], []>} : vector<256x32xbf16>, vector<32x128xbf16>, vector<256x128xf32> -> vector<256x128xf32>
    %24 = arith.addf %18, %23 : vector<256x128xf32>
    %c0_21 = arith.constant 0 : index
    %c64 = arith.constant 64 : index
    %c0_22 = arith.constant 0 : index
    %25 = vector.load %arg1[%c0_21, %c64, %c0_22] : memref<1x352x32xbf16, #tpu.memory_space<vmem>>, vector<1x256x32xbf16>
    %26 = vector.shape_cast %25 : vector<1x256x32xbf16> to vector<256x32xbf16>
    %c4 = arith.constant 4 : index
    %c0_23 = arith.constant 0 : index
    %c0_24 = arith.constant 0 : index
    %27 = vector.load %arg2[%c4, %c0_23, %c0_24] : memref<7x32x128xbf16, #tpu.memory_space<vmem>>, vector<1x32x128xbf16>
    %28 = vector.shape_cast %27 : vector<1x32x128xbf16> to vector<32x128xbf16>
    %cst_25 = arith.constant dense<0.000000e+00> : vector<256x128xf32>
    %29 = tpu.matmul %26, %28, %cst_25 {dimension_numbers = #tpu.dot_dimension_numbers<[1], [0], [0], [1], [0, 0, 1, 1], [], []>} : vector<256x32xbf16>, vector<32x128xbf16>, vector<256x128xf32> -> vector<256x128xf32>
    %30 = arith.addf %24, %29 : vector<256x128xf32>
    %c0_26 = arith.constant 0 : index
    %c80 = arith.constant 80 : index
    %c0_27 = arith.constant 0 : index
    %31 = vector.load %arg1[%c0_26, %c80, %c0_27] : memref<1x352x32xbf16, #tpu.memory_space<vmem>>, vector<1x256x32xbf16>
    %32 = vector.shape_cast %31 : vector<1x256x32xbf16> to vector<256x32xbf16>
    %c5 = arith.constant 5 : index
    %c0_28 = arith.constant 0 : index
    %c0_29 = arith.constant 0 : index
    %33 = vector.load %arg2[%c5, %c0_28, %c0_29] : memref<7x32x128xbf16, #tpu.memory_space<vmem>>, vector<1x32x128xbf16>
    %34 = vector.shape_cast %33 : vector<1x32x128xbf16> to vector<32x128xbf16>
    %cst_30 = arith.constant dense<0.000000e+00> : vector<256x128xf32>
    %35 = tpu.matmul %32, %34, %cst_30 {dimension_numbers = #tpu.dot_dimension_numbers<[1], [0], [0], [1], [0, 0, 1, 1], [], []>} : vector<256x32xbf16>, vector<32x128xbf16>, vector<256x128xf32> -> vector<256x128xf32>
    %36 = arith.addf %30, %35 : vector<256x128xf32>
    %c0_31 = arith.constant 0 : index
    %c96 = arith.constant 96 : index
    %c0_32 = arith.constant 0 : index
    %37 = vector.load %arg1[%c0_31, %c96, %c0_32] : memref<1x352x32xbf16, #tpu.memory_space<vmem>>, vector<1x256x32xbf16>
    %38 = vector.shape_cast %37 : vector<1x256x32xbf16> to vector<256x32xbf16>
    %c6 = arith.constant 6 : index
    %c0_33 = arith.constant 0 : index
    %c0_34 = arith.constant 0 : index
    %39 = vector.load %arg2[%c6, %c0_33, %c0_34] : memref<7x32x128xbf16, #tpu.memory_space<vmem>>, vector<1x32x128xbf16>
    %40 = vector.shape_cast %39 : vector<1x32x128xbf16> to vector<32x128xbf16>
    %cst_35 = arith.constant dense<0.000000e+00> : vector<256x128xf32>
    %41 = tpu.matmul %38, %40, %cst_35 {dimension_numbers = #tpu.dot_dimension_numbers<[1], [0], [0], [1], [0, 0, 1, 1], [], []>} : vector<256x32xbf16>, vector<32x128xbf16>, vector<256x128xf32> -> vector<256x128xf32>
    %42 = arith.addf %36, %41 : vector<256x128xf32>
    %c0_36 = arith.constant 0 : index
    %c0_37 = arith.constant 0 : index
    %43 = vector.load %arg3[%c0_36, %c0_37] : memref<1x128xf32, #tpu.memory_space<vmem>>, vector<1x128xf32>
    %44 = vector.broadcast %43 : vector<1x128xf32> to vector<256x128xf32>
    %45 = arith.addf %42, %44 : vector<256x128xf32>
    %46 = arith.truncf %45 : vector<256x128xf32> to vector<256x128xbf16>
    %c0_38 = arith.constant 0 : index
    %c0_39 = arith.constant 0 : index
    %c0_40 = arith.constant 0 : index
    %47 = vector.load %arg4[%c0_38, %c0_39, %c0_40] : memref<1x256x128xbf16, #tpu.memory_space<vmem>>, vector<1x256x128xbf16>
    %48 = vector.shape_cast %47 : vector<1x256x128xbf16> to vector<256x128xbf16>
    %49 = vector.shape_cast %46 : vector<256x128xbf16> to vector<1x256x128xbf16>
    tpu.vector_store %arg4[%c0_38, %c0_39, %c0_40], %49 {strides = array<i32>} : memref<1x256x128xbf16, #tpu.memory_space<vmem>>, vector<1x256x128xbf16>,
    %50 = vector.shape_cast %45 : vector<256x128xf32> to vector<32x8x128xf32>
    %cst_41 = arith.constant dense<0.000000e+00> : vector<8x128xf32>
    %51 = vector.multi_reduction <add>, %50, %cst_41 [0] : vector<32x8x128xf32> to vector<8x128xf32>
    %c0_42 = arith.constant 0 : index
    %c0_43 = arith.constant 0 : index
    %c0_44 = arith.constant 0 : index
    %52 = vector.load %arg5[%c0_42, %c0_43, %c0_44] : memref<1x8x128xf32, #tpu.memory_space<vmem>>, vector<1x8x128xf32>
    %53 = vector.shape_cast %52 : vector<1x8x128xf32> to vector<8x128xf32>
    %54 = vector.shape_cast %51 : vector<8x128xf32> to vector<1x8x128xf32>
    tpu.vector_store %arg5[%c0_42, %c0_43, %c0_44], %54 {strides = array<i32>} : memref<1x8x128xf32, #tpu.memory_space<vmem>>, vector<1x8x128xf32>,
    %55 = arith.mulf %50, %50 : vector<32x8x128xf32>
    %cst_45 = arith.constant dense<0.000000e+00> : vector<8x128xf32>
    %56 = vector.multi_reduction <add>, %55, %cst_45 [0] : vector<32x8x128xf32> to vector<8x128xf32>
    %c0_46 = arith.constant 0 : index
    %c0_47 = arith.constant 0 : index
    %c0_48 = arith.constant 0 : index
    %57 = vector.load %arg6[%c0_46, %c0_47, %c0_48] : memref<1x8x128xf32, #tpu.memory_space<vmem>>, vector<1x8x128xf32>
    %58 = vector.shape_cast %57 : vector<1x8x128xf32> to vector<8x128xf32>
    %59 = vector.shape_cast %56 : vector<8x128xf32> to vector<1x8x128xf32>
    tpu.vector_store %arg6[%c0_46, %c0_47, %c0_48], %59 {strides = array<i32>} : memref<1x8x128xf32, #tpu.memory_space<vmem>>, vector<1x8x128xf32>,
    return
  }
  func.func @transform_0(%arg0: i32) -> (i32, i32, i32) {
    %c0_i32 = arith.constant 0 : i32
    %c0_i32_0 = arith.constant 0 : i32
    %c0_i32_1 = arith.constant 0 : i32
    return %arg0, %c0_i32, %c0_i32_0 : i32, i32, i32
  }
  func.func @transform_1(%arg0: i32) -> (i32, i32, i32) {
    %c0_i32 = arith.constant 0 : i32
    %c0_i32_0 = arith.constant 0 : i32
    %c0_i32_1 = arith.constant 0 : i32
    %c0_i32_2 = arith.constant 0 : i32
    return %c0_i32, %c0_i32_0, %c0_i32_1 : i32, i32, i32
  }
  func.func @transform_2(%arg0: i32) -> (i32, i32) {
    %c0_i32 = arith.constant 0 : i32
    %c0_i32_0 = arith.constant 0 : i32
    %c0_i32_1 = arith.constant 0 : i32
    return %c0_i32, %c0_i32_0 : i32, i32
  }
  func.func @transform_3(%arg0: i32) -> (i32, i32, i32) {
    %c0_i32 = arith.constant 0 : i32
    %c0_i32_0 = arith.constant 0 : i32
    %c0_i32_1 = arith.constant 0 : i32
    return %arg0, %c0_i32, %c0_i32_0 : i32, i32, i32
  }
  func.func @transform_4(%arg0: i32) -> (i32, i32, i32) {
    %c0_i32 = arith.constant 0 : i32
    %c0_i32_0 = arith.constant 0 : i32
    %c0_i32_1 = arith.constant 0 : i32
    return %arg0, %c0_i32, %c0_i32_0 : i32, i32, i32
  }
  func.func @transform_5(%arg0: i32) -> (i32, i32, i32) {
    %c0_i32 = arith.constant 0 : i32
    %c0_i32_0 = arith.constant 0 : i32
    %c0_i32_1 = arith.constant 0 : i32
    return %arg0, %c0_i32, %c0_i32_0 : i32, i32, i32
  }
}

</mosaic_0001>

<bundles_post_ra>
// kernel: tpu_custom_call.1
= control target key start
LH: loop header
LB: loop body
LE: loop exit
PB: predicated region body
PF: predicated region fallthrough
CT: control target
= control target key end

     0   :  { %s4108_s0 = inlined_call_operand.vmem [shape: bf16[2,352,32], index: 0, kind: input, shape index: {}]   ;;  %s4109_s1 = inlined_call_operand.vmem [shape: bf16[7,32,128], index: 1, kind: input, shape index: {}]   ;;  %s4110_s2 = inlined_call_operand.vmem [shape: f32[1,128], index: 2, kind: input, shape index: {}]   ;;  %s4111_s3 = inlined_call_operand.hbm [shape: bf16[2,256,128], index: 3, kind: output, shape index: {0}]   ;;  %s4112_s4 = inlined_call_operand.hbm [shape: f32[2,8,128], index: 4, kind: output, shape index: {1}]   ;;  %s4113_s5 = inlined_call_operand.hbm [shape: f32[2,8,128], index: 5, kind: output, shape index: {2}]  }
   0x1   :  { %4115 = sst [smem:[#allocation9_spill]] %s4108_s0 }
   0x2   :  { %4116 = sst [smem:[#allocation10_spill]] %s4109_s1 }
   0x3   :  { %4117 = sst [smem:[#allocation11_spill]] %s4110_s2 }
   0x4   :  { %11 = vsyncpa [#allocation3], 0 }
   0x5   :  { %13 = vsyncpa [#allocation3 + $0x1], 0 }
   0x6   :  { %14 = vsyncpa [#allocation5], 0 }
   0x7   :  { %16 = vsyncpa [#allocation5 + $0x1], 0  ;;  %s3508_s18 = smov 0   ;;  %s3510_s19 = smov 0  }
   0x8   :  { %s3512_s20 = smov 0   ;;  %s3514_s21 = smov 0  }
   0x9 LB: > { %s3529_s22 = sadd.s32 4294967295, %s3474_s21   ;;  %s4114_s23 = sadd.s32 4294967294, %s3474_s21   ;;  %s3474_s21 = sphi %s3514_s21, %s4127_s21   ;;  %s3470_s20 = sphi %s3512_s20, %s4126_s20   ;;  %s3466_s19 = sphi %s3510_s19, %s4125_s19   ;;  %s3462_s18 = sphi %s3508_s18, %s4124_s18  }
   0xa   : > { %s3533_s24 = sadd.s32 1, %s3474_s21   ;;  %s97_s25 = sadd.s32 1, %s3470_s20 }
   0xb   : > { %s94_s26 = ssub.s32 %s3474_s21, %s3533_s24  ;;  %p107_p0 = scmp.ne.s32.totalorder %s3470_s20, %s3466_s19 }
   0xc   : > { %p95_p1 = scmp.eq.s32.totalorder %s94_s26, 0  ;;  %p108_p2 = scmp.eq.s32.totalorder %s3529_s22, 1 }
   0xd   : > { %p113_p3 = scmp.ne.s32.totalorder %s3466_s19, %s3462_s18  ;;  %p114_p4 = scmp.eq.s32.totalorder %s4114_s23, 1 }
   0xe   : > { %s3546_s27 = scalar_select %p95_p1, %s3470_s20, %s97_s25  }
   0xf   : > { %p3548_p5 = por %p108_p2, %p107_p0  ;;  %p3552_p6 = por %p114_p4, %p113_p3 }
  0x10   : > { %p2492_p7 = scmp.ge.s32.totalorder %s3474_s21, 1  ;;  %p198_p8 = scmp.lt.s32.totalorder %s3474_s21, 3 }
  0x12   : > { %p199_p9 = pnand %p2492_p7, %p198_p8 }
  0x13   : > { %s4120_s1 = sld [smem:[#allocation10_spill]] (!%p199_p9)  ;;  %p236_p10 = scmp.lt.s32.totalorder (!%p199_p9), %s3529_s22, 1 }
  0x14   : > { %202 = sbr.rel (%p199_p9) target bundleno = 651 (0x28b), region = 32  ;;  %s4121_s0 = sld [smem:[#allocation9_spill]] (!%p199_p9) }
  0x15   : > { %s4122_s2 = sld [smem:[#allocation11_spill]] (!%p199_p9)  ;;  %s3888_s11 = sand.u32 (!%p199_p9), 1, %s3466_s19  }
  0x16   : > { %s2493_s12 = sshll.u32 (!%p199_p9), %s3888_s11, 7  ;;  %s3082_s14 = sshll.u32 (!%p199_p9), %s3529_s22, 3 }
  0x17   : > { %s3197_s15 = sshll.u32 (!%p199_p9), %s3529_s22, 7  ;;  %s2315_s16 = sand.u32 (!%p199_p9), 1, %s3529_s22  }
  0x18   : > { %s2348_s30 = scalar_lea.hbm (!%p199_p9), %s4112_s4, %s3082_s14 }
  0x19   : > { %v3106_v0 = vld [vmem:[%s4120_s1 + $0x18] sm:$0xff]  ;;  %v3103_v1 = vld [vmem:[%s4120_s1 + $0x8] sm:$0xff]  ;;  %v3105_v3 = vld [vmem:[%s4120_s1 + $0x10] sm:$0xff]  ;;  %s237_s13 = scalar_select %p236_p10, %s3529_s22, 1  ;;  %vm377_vm0 = vcmask 261120  }
  0x1a   : > { %v3124_v2 = vld [vmem:[%s4120_s1 + $0x28] sm:$0xff]  ;;  %432 = vmatpush.bf16.msra.mxu0 %v3106_v0  ;;  %3293 = vmatpush.bf16.msra.mxu3 %v3106_v0  ;;  %v3102_v4 = vld [vmem:[%s4120_s1] sm:$0xff]  ;;  %v3178_v8 = vld [vmem:[%s4120_s1 + $0x58] sm:$0xff]  ;;  %s2352_s22 = sshll.u32 %s2348_s30, 4  ;;  %s2353_s22 = int_to_ptr.hbm [resolvable:$true] %s2352_s22 }
  0x1b   : > { %541 = vmatpush.bf16.msra.mxu1 %v3103_v1  ;;  %807 = vmatpush.bf16.msra.mxu2 %v3124_v2  ;;  %v3123_v5 = vld [vmem:[%s4120_s1 + $0x20] sm:$0xff]  ;;  %s3299_s25 = smul.u32 176, %s237_s13  ;;  %v3196_v6 = vld [vmem:[%s4120_s1 + $0x68] sm:$0xff]  ;;  %v3177_v27 = vld [vmem:[%s4120_s1 + $0x50] sm:$0xff]  ;;  %s3898_s13 = scalar_lea.vmem [#allocation2], %s2493_s12 }
  0x1c   : > { %v3160_v7 = vld [vmem:[%s4120_s1 + $0x48] sm:$0xff]  ;;  %v3195_v25 = vld [vmem:[%s4120_s1 + $0x60] sm:$0xff]  ;;  %v3142_v32 = vld [vmem:[%s4120_s1 + $0x38] sm:$0xff]  ;;  %s2333_s17 = sshll.u32 %s3898_s13, 4  ;;  %s2332_s12 = scalar_lea.hbm %s4111_s3, %s3197_s15  ;;  %s4036_s17 = int_to_ptr.vmem [resolvable:$true] %s2333_s17 }
  0x1d   : > { %s3584_s8 = scalar_lea.vmem %s4121_s0, %s3299_s25  ;;  %v3159_v26 = vld [vmem:[%s4120_s1 + $0x40] sm:$0xff]  ;;  %v3141_v41 = vld [vmem:[%s4120_s1 + $0x30] sm:$0xff]  ;;  %s2362_s1 = scalar_lea.hbm %s4113_s5, %s3082_s14 }
  0x1e   : > { %433 = vmatpush.bf16.msra.mxu0 %v3105_v3  ;;  %3294 = vmatpush.bf16.msra.mxu3 %v3105_v3  ;;  %v3087_v9 = vld [vmem:[%s3584_s8 + $0x8] sm:$0xff]  ;;  %v3086_v11 = vld [vmem:[%s3584_s8] sm:$0xff]  ;;  %v3107_v12 = vld [vmem:[%s3584_s8 + $0x10] sm:$0xff]  ;;  %s2335_s25 = sshll.u32 %s2332_s12, 4  ;;  %s2366_s9 = sshll.u32 %s2362_s1, 4  ;;  %s4041_s25 = int_to_ptr.hbm [resolvable:$true] %s2335_s25  ;;  %s4045_s9 = int_to_ptr.hbm [resolvable:$true] %s2366_s9 }
  0x1f   : > { %542 = vmatpush.bf16.msra.mxu1 %v3102_v4  ;;  %808 = vmatpush.bf16.msra.mxu2 %v3123_v5  ;;  %v3099_v10 = vld [vmem:[%s3584_s8 + $0x68] sm:$0xff]  ;;  %v3088_v13 = vld [vmem:[%s3584_s8 + $0x10] sm:$0xff]  ;;  %v3108_v15 = vld [vmem:[%s3584_s8 + $0x18] sm:$0xff]  ;;  %s4047_s0 = scalar_lea.sflag [#allocation5], %s2315_s16  ;;  %s3366_s23 = sshra.s32 %s2353_s22, 4  ;;  %s3367_s23 = int_to_ptr.hbm [resolvable:$true] %s3366_s23 }
  0x20   : > { %v3100_v14 = vld [vmem:[%s3584_s8 + $0x70] sm:$0xff]  ;;  %v3089_v16 = vld [vmem:[%s3584_s8 + $0x18] sm:$0xff]  ;;  %v3109_v18 = vld [vmem:[%s3584_s8 + $0x20] sm:$0xff]  ;;  %s3368_s14 = scalar_lea.hbm %s3367_s23, 8  ;;  %p3373_p0 = scmp.lt.s32.totalorder %s3367_s23, %s4112_s4 }
  0x21   : > { %2573 = vmatmul.msk.bf16.vlgmr.msra.gmra.mxu0 %vm377_vm0, %v3087_v9  ;;  %2585 = vmatmul.msk.bf16.vlgmr.msra.gmra.mxu3 %vm377_vm0, %v3099_v10  ;;  %v3101_v17 = vld [vmem:[%s3584_s8 + $0x78] sm:$0xff]  ;;  %v3090_v19 = vld [vmem:[%s3584_s8 + $0x20] sm:$0xff]  ;;  %v3110_v21 = vld [vmem:[%s3584_s8 + $0x28] sm:$0xff]  ;;  %p3369_p11 = scmp.ne.s32.totalorder %s3367_s23, %s3368_s14 }
  0x22   : > { %3295 = vmatpush.bf16.msrb.mxu3 %v3103_v1  ;;  %2601 = vmatmul.msk.bf16.vlgmr.msra.gmra.mxu1 %vm377_vm0, %v3086_v11  ;;  %v3104_v20 = vld [vmem:[%s3584_s8 + $0x80] sm:$0xff]  ;;  %v3091_v22 = vld [vmem:[%s3584_s8 + $0x28] sm:$0xff]  ;;  %v3111_v24 = vld [vmem:[%s3584_s8 + $0x30] sm:$0xff] }
  0x23   : > { %1999 = vmatpush.bf16.msrb.mxu2 %v3196_v6  ;;  %1403 = vmatpush.bf16.msrb.mxu0 %v3160_v7  ;;  %v3623_v23 = vld [vmem:[%s3584_s8 + $0x60] sm:$0xff]  ;;  %v3092_v28 = vld [vmem:[%s3584_s8 + $0x30] sm:$0xff]  ;;  %v3112_v29 = vld [vmem:[%s3584_s8 + $0x38] sm:$0xff]  ;;  %p3370_p12 = pnand %p3369_p11, %p3548_p5 }
  0x24   : > { %2693 = vmatmul.msk.bf16.vlgmr.msra.gmra.mxu2 %vm377_vm0, %v3107_v12  ;;  %1701 = vmatpush.bf16.msrb.mxu1 %v3178_v8  ;;  %v3093_v30 = vld [vmem:[%s3584_s8 + $0x38] sm:$0xff]  ;;  %v3113_v31 = vld [vmem:[%s3584_s8 + $0x40] sm:$0xff]  ;;  %v3114_v34 = vld [vmem:[%s3584_s8 + $0x48] sm:$0xff] }
  0x25   : > { %v3094_v33 = vld [vmem:[%s3584_s8 + $0x40] sm:$0xff]  ;;  %v3095_v35 = vld [vmem:[%s3584_s8 + $0x48] sm:$0xff]  ;;  %v3119_v36 = vld [vmem:[%s3584_s8 + $0x70] sm:$0xff]  ;;  %p3371_p13 = pneg %p3370_p12 }
  0x26   : > { %3296 = vmatpush.bf16.msrb.mxu3 %v3102_v4  ;;  %v3115_v38 = vld [vmem:[%s3584_s8 + $0x50] sm:$0xff]  ;;  %v3120_v51 = vld [vmem:[%s3584_s8 + $0x78] sm:$0xff] }
  0x27   : > { %2000 = vmatpush.bf16.msrb.mxu2 %v3195_v25  ;;  %1404 = vmatpush.bf16.msrb.mxu0 %v3159_v26  ;;  %v3096_v50 = vld [vmem:[%s3584_s8 + $0x50] sm:$0xff]  ;;  %v3116_v54 = vld [vmem:[%s3584_s8 + $0x58] sm:$0xff] }
  0x28   : > { %1702 = vmatpush.bf16.msrb.mxu1 %v3177_v27  ;;  %v3097_v1 = vld [vmem:[%s3584_s8 + $0x58] sm:$0xff] }
  0x2a   : > { %3297 = vmatpush.bf16.msra.mxu3 %v3124_v2  ;;  %v3121_v2 = vld [vmem:[%s3584_s8 + $0x80] sm:$0xff] }
  0x2e   : > { %3298 = vmatpush.bf16.msra.mxu3 %v3123_v5  ;;  %v3117_v5 = vld [vmem:[%s3584_s8 + $0x60] sm:$0xff] }
  0x31   : > { %2574 = vmatmul.msk.bf16.gmra.mxu0 %vm377_vm0, %v3088_v13  ;;  %2586 = vmatmul.msk.bf16.gmra.mxu3 %vm377_vm0, %v3100_v14 }
  0x32   : > { %2602 = vmatmul.msk.bf16.gmra.mxu1 %vm377_vm0, %v3087_v9 }
  0x34   : > { %2694 = vmatmul.msk.bf16.gmra.mxu2 %vm377_vm0, %v3108_v15 }
  0x41   : > { %2575 = vmatmul.msk.bf16.gmra.mxu0 %vm377_vm0, %v3089_v16  ;;  %2587 = vmatmul.msk.bf16.gmra.mxu3 %vm377_vm0, %v3101_v17 }
  0x42   : > { %2603 = vmatmul.msk.bf16.gmra.mxu1 %vm377_vm0, %v3088_v13 }
  0x44   : > { %2695 = vmatmul.msk.bf16.gmra.mxu2 %vm377_vm0, %v3109_v18 }
  0x51   : > { %2576 = vmatmul.msk.bf16.gmra.mxu0 %vm377_vm0, %v3090_v19  ;;  %2588 = vmatmul.msk.bf16.gmra.mxu3 %vm377_vm0, %v3104_v20 }
  0x52   : > { %2604 = vmatmul.msk.bf16.gmra.mxu1 %vm377_vm0, %v3089_v16  ;;  %v3122_v16 = vld [vmem:[%s3584_s8 + $0x88] sm:$0xff] }
  0x54   : > { %2696 = vmatmul.msk.bf16.gmra.mxu2 %vm377_vm0, %v3110_v21 }
  0x61   : > { %2577 = vmatmul.msk.bf16.gmra.mxu0 %vm377_vm0, %v3091_v22  ;;  %2613 = vmatmul.msk.bf16.vlgmr.msrb.gmra.mxu3 %vm377_vm0, %v3623_v23 }
  0x62   : > { %2605 = vmatmul.msk.bf16.gmra.mxu1 %vm377_vm0, %v3090_v19  ;;  %1105 = vmatpush.bf16.msrb.mxu3 %v3142_v32  ;;  %v3118_v19 = vld [vmem:[%s3584_s8 + $0x68] sm:$0xff] }
  0x64   : > { %2697 = vmatmul.msk.bf16.gmra.mxu2 %vm377_vm0, %v3111_v24 }
  0x66   : > { %1106 = vmatpush.bf16.msrb.mxu3 %v3141_v41 }
  0x71   : > { %2578 = vmatmul.msk.bf16.gmra.mxu0 %vm377_vm0, %v3092_v28  ;;  %2614 = vmatmul.msk.bf16.gmra.mxu3 %vm377_vm0, %v3099_v10 }
  0x72   : > { %2606 = vmatmul.msk.bf16.gmra.mxu1 %vm377_vm0, %v3091_v22 }
  0x74   : > { %2698 = vmatmul.msk.bf16.gmra.mxu2 %vm377_vm0, %v3112_v29 }
  0x81   : > { %2579 = vmatmul.msk.bf16.gmra.mxu0 %vm377_vm0, %v3093_v30  ;;  %2615 = vmatmul.msk.bf16.gmra.mxu3 %vm377_vm0, %v3100_v14 }
  0x82   : > { %2607 = vmatmul.msk.bf16.gmra.mxu1 %vm377_vm0, %v3092_v28 }
  0x84   : > { %2699 = vmatmul.msk.bf16.gmra.mxu2 %vm377_vm0, %v3113_v31  ;;  %v3143_v31 = vld [vmem:[%s3584_s8 + $0x20] sm:$0xff] }
  0x91   : > { %2580 = vmatmul.msk.bf16.gmra.mxu0 %vm377_vm0, %v3094_v33  ;;  %2616 = vmatmul.msk.bf16.gmra.mxu3 %vm377_vm0, %v3101_v17 }
  0x92   : > { %2608 = vmatmul.msk.bf16.gmra.mxu1 %vm377_vm0, %v3093_v30 }
  0x94   : > { %2700 = vmatmul.msk.bf16.gmra.mxu2 %vm377_vm0, %v3114_v34  ;;  %v3179_v34 = vld [vmem:[%s3584_s8 + $0x30] sm:$0xff] }
  0x9e   : > { %v435_v37 = vpop.f32.mrf.mxu0 }
  0x9f   : > { %v544_v39 = vpop.f32.mrf.mxu1 }
  0xa0   : > { %v545_v40 = vadd.f32 %v544_v39, %v435_v37 }
  0xa1   : > { %2581 = vmatmul.msk.bf16.gmra.mxu0 %vm377_vm0, %v3095_v35  ;;  %2705 = vmatmul.msk.bf16.vlgmr.msra.gmra.mxu3 %vm377_vm0, %v3119_v36 }
  0xa2   : > { %2609 = vmatmul.msk.bf16.gmra.mxu1 %vm377_vm0, %v3094_v33 }
  0xa4   : > { %2701 = vmatmul.msk.bf16.gmra.mxu2 %vm377_vm0, %v3115_v38  ;;  %v3671_v42 = vpop.f32.mrf.mxu3 }
  0xa6   : > { %v437_v45 = vpop.f32.mrf.mxu0 }
  0xa7   : > { %v810_v43 = vpop.f32.mrf.mxu2  ;;  %v546_v46 = vpop.f32.mrf.mxu1 }
  0xa8   : > { %v3673_v44 = vadd.f32 %v810_v43, %v545_v40  ;;  %v547_v47 = vadd.f32 %v546_v46, %v437_v45 }
  0xac   : > { %v3675_v48 = vpop.f32.mrf.mxu3 }
  0xae   : > { %v440_v53 = vpop.f32.mrf.mxu0 }
  0xaf   : > { %v812_v49 = vpop.f32.mrf.mxu2  ;;  %v549_v55 = vpop.f32.mrf.mxu1 }
  0xb0   : > { %v3679_v52 = vadd.f32 %v812_v49, %v547_v47  ;;  %v550_v56 = vadd.f32 %v549_v55, %v440_v53  ;;  %v3144_v53 = vld [vmem:[%s3584_s8 + $0x28] sm:$0xff] }
  0xb1   : > { %2582 = vmatmul.msk.bf16.gmra.mxu0 %vm377_vm0, %v3096_v50  ;;  %2706 = vmatmul.msk.bf16.gmra.mxu3 %vm377_vm0, %v3120_v51  ;;  %v3126_v51 = vld [vmem:[%s3584_s8 + $0x20] sm:$0xff] }
  0xb2   : > { %2610 = vmatmul.msk.bf16.gmra.mxu1 %vm377_vm0, %v3095_v35  ;;  %v3161_v35 = vld [vmem:[%s3584_s8 + $0x28] sm:$0xff] }
  0xb4   : > { %2702 = vmatmul.msk.bf16.gmra.mxu2 %vm377_vm0, %v3116_v54  ;;  %v3686_v57 = vpop.f32.mrf.mxu3 }
  0xb6   : > { %v442_v60 = vpop.f32.mrf.mxu0 }
  0xb7   : > { %v815_v58 = vpop.f32.mrf.mxu2  ;;  %v551_v61 = vpop.f32.mrf.mxu1 }
  0xb8   : > { %v3688_v59 = vadd.f32 %v815_v58, %v550_v56  ;;  %v552_v62 = vadd.f32 %v551_v61, %v442_v60  ;;  %v3180_v56 = vld [vmem:[%s3584_s8 + $0x38] sm:$0xff]  ;;  %v3162_v58 = vld [vmem:[%s3584_s8 + $0x30] sm:$0xff] }
  0xbc   : > { %v3690_v63 = vpop.f32.mrf.mxu3 }
  0xbe   : > { %v445_v4 = vpop.f32.mrf.mxu0 }
  0xbf   : > { %v817_v0 = vpop.f32.mrf.mxu2  ;;  %v554_v6 = vpop.f32.mrf.mxu1 }
  0xc0   : > { %v3694_v3 = vadd.f32 %v817_v0, %v552_v62  ;;  %v555_v7 = vadd.f32 %v554_v6, %v445_v4 }
  0xc1   : > { %2583 = vmatmul.msk.bf16.gmra.mxu0 %vm377_vm0, %v3097_v1  ;;  %2707 = vmatmul.msk.bf16.gmra.mxu3 %vm377_vm0, %v3121_v2 }
  0xc2   : > { %2611 = vmatmul.msk.bf16.gmra.mxu1 %vm377_vm0, %v3096_v50 }
  0xc4   : > { %2703 = vmatmul.msk.bf16.gmra.mxu2 %vm377_vm0, %v3117_v5  ;;  %v3701_v8 = vpop.f32.mrf.mxu3 }
  0xc6   : > { %v447_v11 = vpop.f32.mrf.mxu0 }
  0xc7   : > { %v820_v9 = vpop.f32.mrf.mxu2  ;;  %v556_v12 = vpop.f32.mrf.mxu1 }
  0xc8   : > { %v3703_v10 = vadd.f32 %v820_v9, %v555_v7  ;;  %v557_v13 = vadd.f32 %v556_v12, %v447_v11  ;;  %v3127_v9 = vld [vmem:[%s3584_s8 + $0x28] sm:$0xff]  ;;  %v3145_v11 = vld [vmem:[%s3584_s8 + $0x30] sm:$0xff] }
  0xcc   : > { %v3705_v14 = vpop.f32.mrf.mxu3 }
  0xce   : > { %v450_v18 = vpop.f32.mrf.mxu0 }
  0xcf   : > { %v822_v15 = vpop.f32.mrf.mxu2  ;;  %v559_v20 = vpop.f32.mrf.mxu1 }
  0xd0   : > { %v3708_v17 = vadd.f32 %v822_v15, %v557_v13  ;;  %v560_v21 = vadd.f32 %v559_v20, %v450_v18  ;;  %v3181_v15 = vld [vmem:[%s3584_s8 + $0x40] sm:$0xff] }
  0xd1   : > { %2584 = vmatmul.msk.bf16.gmra.mxu0 %vm377_vm0, %v3623_v23  ;;  %2708 = vmatmul.msk.bf16.gmra.mxu3 %vm377_vm0, %v3122_v16  ;;  %v3125_v23 = vld [vmem:[%s3584_s8 + $0x18] sm:$0xff] }
  0xd2   : > { %2612 = vmatmul.msk.bf16.gmra.mxu1 %vm377_vm0, %v3097_v1  ;;  %v3163_v16 = vld [vmem:[%s3584_s8 + $0x38] sm:$0xff] }
  0xd4   : > { %2704 = vmatmul.msk.bf16.gmra.mxu2 %vm377_vm0, %v3118_v19  ;;  %v3716_v22 = vpop.f32.mrf.mxu3 }
  0xd6   : > { %v452_v26 = vpop.f32.mrf.mxu0 }
  0xd7   : > { %v825_v24 = vpop.f32.mrf.mxu2  ;;  %v561_v27 = vpop.f32.mrf.mxu1 }
  0xd8   : > { %v3718_v25 = vadd.f32 %v825_v24, %v560_v21  ;;  %v562_v28 = vadd.f32 %v561_v27, %v452_v26 }
  0xdc   : > { %v3720_v29 = vpop.f32.mrf.mxu3 }
  0xde   : > { %v455_v33 = vpop.f32.mrf.mxu0 }
  0xdf   : > { %v827_v30 = vpop.f32.mrf.mxu2  ;;  %v564_v36 = vpop.f32.mrf.mxu1 }
  0xe0   : > { %v3724_v32 = vadd.f32 %v827_v30, %v562_v28  ;;  %v565_v37 = vadd.f32 %v564_v36, %v455_v33  ;;  %v3146_v33 = vld [vmem:[%s3584_s8 + $0x38] sm:$0xff]  ;;  %v3182_v36 = vld [vmem:[%s3584_s8 + $0x48] sm:$0xff] }
  0xe1   : > { %2785 = vmatmul.msk.bf16.vlgmr.msrb.gmra.mxu3 %vm377_vm0, %v3125_v23  ;;  %2877 = vmatmul.msk.bf16.vlgmr.msrb.gmra.mxu0 %vm377_vm0, %v3143_v31  ;;  %v3128_v31 = vld [vmem:[%s3584_s8 + $0x30] sm:$0xff] }
  0xe2   : > { %2969 = vmatmul.msk.bf16.vlgmr.msrb.gmra.mxu1 %vm377_vm0, %v3161_v35 }
  0xe4   : > { %3061 = vmatmul.msk.bf16.vlgmr.msrb.gmra.mxu2 %vm377_vm0, %v3179_v34  ;;  %v604_v38 = vpop.f32.mrf.mxu3 }
  0xe5   : > { %v3733_v39 = vadd.f32 %v604_v38, %v3671_v42 }
  0xe6   : > { %v457_v43 = vpop.f32.mrf.mxu0 }
  0xe7   : > { %v830_v40 = vpop.f32.mrf.mxu2  ;;  %v566_v45 = vpop.f32.mrf.mxu1 }
  0xe8   : > { %v3735_v41 = vadd.f32 %v830_v40, %v565_v37  ;;  %v567_v46 = vadd.f32 %v566_v45, %v457_v43  ;;  %v3164_v37 = vld [vmem:[%s3584_s8 + $0x40] sm:$0xff] }
  0xec   : > { %v606_v47 = vpop.f32.mrf.mxu3 }
  0xed   : > { %v3738_v49 = vadd.f32 %v606_v47, %v3675_v48 }
  0xee   : > { %v460_v55 = vpop.f32.mrf.mxu0 }
  0xef   : > { %v832_v50 = vpop.f32.mrf.mxu2  ;;  %v569_v42 = vpop.f32.mrf.mxu1 }
  0xf0   : > { %v3742_v54 = vadd.f32 %v832_v50, %v567_v46  ;;  %v570_v60 = vadd.f32 %v569_v42, %v460_v55 }
  0xf1   : > { %2786 = vmatmul.msk.bf16.gmra.mxu3 %vm377_vm0, %v3126_v51  ;;  %2878 = vmatmul.msk.bf16.gmra.mxu0 %vm377_vm0, %v3144_v53 }
  0xf2   : > { %2970 = vmatmul.msk.bf16.gmra.mxu1 %vm377_vm0, %v3162_v58  ;;  %v3147_v58 = vld [vmem:[%s3584_s8 + $0x40] sm:$0xff] }
  0xf4   : > { %3062 = vmatmul.msk.bf16.gmra.mxu2 %vm377_vm0, %v3180_v56  ;;  %v609_v48 = vpop.f32.mrf.mxu3  ;;  %v3129_v56 = vld [vmem:[%s3584_s8 + $0x38] sm:$0xff] }
  0xf5   : > { %v3751_v61 = vadd.f32 %v609_v48, %v3686_v57  ;;  %v3183_v48 = vld [vmem:[%s3584_s8 + $0x50] sm:$0xff] }
  0xf6   : > { %v462_v1 = vpop.f32.mrf.mxu0 }
  0xf7   : > { %v835_v62 = vpop.f32.mrf.mxu2  ;;  %v571_v2 = vpop.f32.mrf.mxu1 }
  0xf8   : > { %v3753_v0 = vadd.f32 %v835_v62, %v570_v60  ;;  %v572_v4 = vadd.f32 %v571_v2, %v462_v1  ;;  %v3165_v62 = vld [vmem:[%s3584_s8 + $0x48] sm:$0xff] }
  0xfc   : > { %v611_v5 = vpop.f32.mrf.mxu3 }
  0xfd   : > { %v3756_v6 = vadd.f32 %v611_v5, %v3690_v63 }
  0xfe   : > { %v465_v13 = vpop.f32.mrf.mxu0 }
  0xff   : > { %v837_v7 = vpop.f32.mrf.mxu2  ;;  %v574_v57 = vpop.f32.mrf.mxu1 }
 0x100   : > { %v3760_v12 = vadd.f32 %v837_v7, %v572_v4  ;;  %v575_v18 = vadd.f32 %v574_v57, %v465_v13  ;;  %v3130_v57 = vld [vmem:[%s3584_s8 + $0x40] sm:$0xff] }
 0x101   : > { %2787 = vmatmul.msk.bf16.gmra.mxu3 %vm377_vm0, %v3127_v9  ;;  %2879 = vmatmul.msk.bf16.gmra.mxu0 %vm377_vm0, %v3145_v11 }
 0x102   : > { %2971 = vmatmul.msk.bf16.gmra.mxu1 %vm377_vm0, %v3163_v16 }
 0x104   : > { %3063 = vmatmul.msk.bf16.gmra.mxu2 %vm377_vm0, %v3181_v15  ;;  %v614_v63 = vpop.f32.mrf.mxu3 }
 0x105   : > { %v3769_v19 = vadd.f32 %v614_v63, %v3701_v8 }
 0x106   : > { %v467_v24 = vpop.f32.mrf.mxu0 }
 0x107   : > { %v840_v20 = vpop.f32.mrf.mxu2  ;;  %v576_v26 = vpop.f32.mrf.mxu1 }
 0x108   : > { %v3771_v21 = vadd.f32 %v840_v20, %v575_v18  ;;  %v577_v27 = vadd.f32 %v576_v26, %v467_v24  ;;  %v3148_v18 = vld [vmem:[%s3584_s8 + $0x48] sm:$0xff]  ;;  %v3184_v24 = vld [vmem:[%s3584_s8 + $0x58] sm:$0xff]  ;;  %v3166_v26 = vld [vmem:[%s3584_s8 + $0x50] sm:$0xff] }
 0x10c   : > { %v616_v28 = vpop.f32.mrf.mxu3 }
 0x10d   : > { %v3774_v30 = vadd.f32 %v616_v28, %v3705_v14 }
 0x10e   : > { %v470_v35 = vpop.f32.mrf.mxu0 }
 0x10f   : > { %v842_v23 = vpop.f32.mrf.mxu2  ;;  %v579_v8 = vpop.f32.mrf.mxu1 }
 0x110   : > { %v3778_v34 = vadd.f32 %v842_v23, %v577_v27  ;;  %v580_v38 = vadd.f32 %v579_v8, %v470_v35 }
 0x111   : > { %2788 = vmatmul.msk.bf16.gmra.mxu3 %vm377_vm0, %v3128_v31  ;;  %2880 = vmatmul.msk.bf16.gmra.mxu0 %vm377_vm0, %v3146_v33 }
 0x112   : > { %2972 = vmatmul.msk.bf16.gmra.mxu1 %vm377_vm0, %v3164_v37 }
 0x114   : > { %3064 = vmatmul.msk.bf16.gmra.mxu2 %vm377_vm0, %v3182_v36  ;;  %v619_v14 = vpop.f32.mrf.mxu3 }
 0x115   : > { %v3787_v40 = vadd.f32 %v619_v14, %v3716_v22  ;;  %v3131_v14 = vld [vmem:[%s3584_s8 + $0x48] sm:$0xff] }
 0x116   : > { %v472_v46 = vpop.f32.mrf.mxu0 }
 0x117   : > { %v845_v43 = vpop.f32.mrf.mxu2  ;;  %v581_v47 = vpop.f32.mrf.mxu1 }
 0x118   : > { %v3789_v45 = vadd.f32 %v845_v43, %v580_v38  ;;  %v582_v50 = vadd.f32 %v581_v47, %v472_v46  ;;  %v3149_v43 = vld [vmem:[%s3584_s8 + $0x50] sm:$0xff] }
 0x11c   : > { %v621_v51 = vpop.f32.mrf.mxu3 }
 0x11d   : > { %v3792_v53 = vadd.f32 %v621_v51, %v3720_v29  ;;  %v3167_v51 = vld [vmem:[%s3584_s8 + $0x58] sm:$0xff] }
 0x11e   : > { %v475_v60 = vpop.f32.mrf.mxu0 }
 0x11f   : > { %v847_v55 = vpop.f32.mrf.mxu2  ;;  %v584_v22 = vpop.f32.mrf.mxu1 }
 0x120   : > { %v3796_v42 = vadd.f32 %v847_v55, %v582_v50  ;;  %v585_v1 = vadd.f32 %v584_v22, %v475_v60  ;;  %v3185_v50 = vld [vmem:[%s3584_s8 + $0x60] sm:$0xff] }
 0x121   : > { %2789 = vmatmul.msk.bf16.gmra.mxu3 %vm377_vm0, %v3129_v56  ;;  %2881 = vmatmul.msk.bf16.gmra.mxu0 %vm377_vm0, %v3147_v58 }
 0x122   : > { %2973 = vmatmul.msk.bf16.gmra.mxu1 %vm377_vm0, %v3165_v62 }
 0x124   : > { %3065 = vmatmul.msk.bf16.gmra.mxu2 %vm377_vm0, %v3183_v48  ;;  %v870_v29 = vpop.f32.mrf.mxu3 }
 0x125   : > { %v3805_v4 = vadd.f32 %v870_v29, %v3733_v39 }
 0x126   : > { %v477_v7 = vpop.f32.mrf.mxu0 }
 0x127   : > { %v850_v2 = vpop.f32.mrf.mxu2  ;;  %v586_v9 = vpop.f32.mrf.mxu1 }
 0x128   : > { %v3807_v5 = vadd.f32 %v850_v2, %v585_v1  ;;  %v587_v11 = vadd.f32 %v586_v9, %v477_v7  ;;  %v3132_v7 = vld [vmem:[%s3584_s8 + $0x50] sm:$0xff]  ;;  %v3150_v9 = vld [vmem:[%s3584_s8 + $0x58] sm:$0xff] }
 0x12c   : > { %v872_v13 = vpop.f32.mrf.mxu3 }
 0x12d   : > { %v3810_v16 = vadd.f32 %v872_v13, %v3738_v49 }
 0x12e   : > { %v480_v20 = vpop.f32.mrf.mxu0 }
 0x12f   : > { %v852_v15 = vpop.f32.mrf.mxu2  ;;  %v589_v27 = vpop.f32.mrf.mxu1 }
 0x130   : > { %v3814_v63 = vadd.f32 %v852_v15, %v587_v11  ;;  %v590_v39 = vadd.f32 %v589_v27, %v480_v20  ;;  %v3186_v15 = vld [vmem:[%s3584_s8 + $0x68] sm:$0xff] }
 0x131   : > { %2790 = vmatmul.msk.bf16.gmra.mxu3 %vm377_vm0, %v3130_v57  ;;  %2882 = vmatmul.msk.bf16.gmra.mxu0 %vm377_vm0, %v3148_v18  ;;  %v3168_v57 = vld [vmem:[%s3584_s8 + $0x60] sm:$0xff] }
 0x132   : > { %2974 = vmatmul.msk.bf16.gmra.mxu1 %vm377_vm0, %v3166_v26 }
 0x134   : > { %3066 = vmatmul.msk.bf16.gmra.mxu2 %vm377_vm0, %v3184_v24  ;;  %v875_v49 = vpop.f32.mrf.mxu3 }
 0x135   : > { %v3823_v23 = vadd.f32 %v875_v49, %v3751_v61 }
 0x136   : > { %v482_v33 = vpop.f32.mrf.mxu0 }
 0x137   : > { %v855_v28 = vpop.f32.mrf.mxu2  ;;  %v591_v35 = vpop.f32.mrf.mxu1 }
 0x138   : > { %v3825_v31 = vadd.f32 %v855_v28, %v590_v39  ;;  %v592_v36 = vadd.f32 %v591_v35, %v482_v33 }
 0x13c   : > { %v877_v37 = vpop.f32.mrf.mxu3 }
 0x13d   : > { %v3828_v38 = vadd.f32 %v877_v37, %v3756_v6  ;;  %v3151_v37 = vld [vmem:[%s3584_s8 + $0x60] sm:$0xff] }
 0x13e   : > { %v485_v47 = vpop.f32.mrf.mxu0 }
 0x13f   : > { %v857_v8 = vpop.f32.mrf.mxu2  ;;  %v594_v55 = vpop.f32.mrf.mxu1 }
 0x140   : > { %v3832_v46 = vadd.f32 %v857_v8, %v592_v36  ;;  %v595_v61 = vadd.f32 %v594_v55, %v485_v47  ;;  %v3133_v36 = vld [vmem:[%s3584_s8 + $0x58] sm:$0xff]  ;;  %v3169_v47 = vld [vmem:[%s3584_s8 + $0x68] sm:$0xff] }
 0x141   : > { %2791 = vmatmul.msk.bf16.gmra.mxu3 %vm377_vm0, %v3131_v14  ;;  %2883 = vmatmul.msk.bf16.gmra.mxu0 %vm377_vm0, %v3149_v43  ;;  %v3187_v43 = vld [vmem:[%s3584_s8 + $0x70] sm:$0xff] }
 0x142   : > { %2975 = vmatmul.msk.bf16.gmra.mxu1 %vm377_vm0, %v3167_v51 }
 0x144   : > { %3067 = vmatmul.msk.bf16.gmra.mxu2 %vm377_vm0, %v3185_v50  ;;  %v880_v6 = vpop.f32.mrf.mxu3 }
 0x145   : > { %v3841_v58 = vadd.f32 %v880_v6, %v3769_v19 }
 0x146   : > { %v487_v48 = vpop.f32.mrf.mxu0 }
 0x147   : > { %v860_v56 = vpop.f32.mrf.mxu2  ;;  %v596_v62 = vpop.f32.mrf.mxu1 }
 0x148   : > { %v3843_v60 = vadd.f32 %v860_v56, %v595_v61  ;;  %v597_v22 = vadd.f32 %v596_v62, %v487_v48 }
 0x14c   : > { %v882_v1 = vpop.f32.mrf.mxu3 }
 0x14d   : > { %v3846_v2 = vadd.f32 %v882_v1, %v3774_v30  ;;  %v3134_v1 = vld [vmem:[%s3584_s8 + $0x60] sm:$0xff] }
 0x14e   : > { %v490_v13 = vpop.f32.mrf.mxu0 }
 0x14f   : > { %v862_v29 = vpop.f32.mrf.mxu2  ;;  %v599_v18 = vpop.f32.mrf.mxu1 }
 0x150   : > { %v3850_v11 = vadd.f32 %v862_v29, %v597_v22  ;;  %v600_v19 = vadd.f32 %v599_v18, %v490_v13  ;;  %v3152_v29 = vld [vmem:[%s3584_s8 + $0x68] sm:$0xff] }
 0x151   : > { %2792 = vmatmul.msk.bf16.gmra.mxu3 %vm377_vm0, %v3132_v7  ;;  %2884 = vmatmul.msk.bf16.gmra.mxu0 %vm377_vm0, %v3150_v9  ;;  %v3883_v9 = vld [vmem:[%s4122_s2] ss:$0 sm:$0xff] }
 0x152   : > { %2976 = vmatmul.msk.bf16.gmra.mxu1 %vm377_vm0, %v3168_v57 }
 0x154   : > { %3068 = vmatmul.msk.bf16.gmra.mxu2 %vm377_vm0, %v3186_v15  ;;  %v885_v30 = vpop.f32.mrf.mxu3  ;;  %v3170_v15 = vld [vmem:[%s3584_s8 + $0x70] sm:$0xff] }
 0x155   : > { %v3859_v24 = vadd.f32 %v885_v30, %v3787_v40 }
 0x156   : > { %v492_v27 = vpop.f32.mrf.mxu0 }
 0x157   : > { %v865_v20 = vpop.f32.mrf.mxu2  ;;  %v601_v39 = vpop.f32.mrf.mxu1 }
 0x158   : > { %v3861_v26 = vadd.f32 %v865_v20, %v600_v19  ;;  %v602_v49 = vadd.f32 %v601_v39, %v492_v27 }
 0x15c   : > { %v887_v28 = vpop.f32.mrf.mxu3 }
 0x15d   : > { %v3864_v35 = vadd.f32 %v887_v28, %v3792_v53 }
 0x15e   : > { %v1406_v14 = vpop.f32.mrf.mxu0 }
 0x15f   : > { %v867_v33 = vpop.f32.mrf.mxu2  ;;  %v1704_v40 = vpop.f32.mrf.mxu1 }
 0x160   : > { %v3868_v8 = vadd.f32 %v867_v33, %v602_v49 }
 0x161   : > { %2793 = vmatmul.msk.bf16.gmra.mxu3 %vm377_vm0, %v3133_v36  ;;  %2885 = vmatmul.msk.bf16.gmra.mxu0 %vm377_vm0, %v3151_v37 }
 0x162   : > { %2977 = vmatmul.msk.bf16.gmra.mxu1 %vm377_vm0, %v3169_v47 }
 0x164   : > { %3069 = vmatmul.msk.bf16.gmra.mxu2 %vm377_vm0, %v3187_v43  ;;  %v1108_v53 = vpop.f32.mrf.mxu3 }
 0x165   : > { %v1188_v50 = vadd.f32 %v1108_v53, %v3673_v44  ;;  %v3188_v44 = vld [vmem:[%s3584_s8 + $0x78] sm:$0xff] }
 0x166   : > { %v1408_v55 = vpop.f32.mrf.mxu0 }
 0x167   : > { %v2002_v51 = vpop.f32.mrf.mxu2  ;;  %v1486_v61 = vadd.f32 %v1406_v14, %v1188_v50  ;;  %v1706_v6 = vpop.f32.mrf.mxu1 }
 0x169   : > { %v1784_v56 = vadd.f32 %v1704_v40, %v1486_v61 }
 0x16b   : > { %v2082_v7 = vadd.f32 %v2002_v51, %v1784_v56  ;;  %v3153_v56 = vld [vmem:[%s3584_s8 + $0x70] sm:$0xff] }
 0x16c   : > { %v1110_v48 = vpop.f32.mrf.mxu3 }
 0x16d   : > { %v1189_v62 = vadd.f32 %v1110_v48, %v3679_v52  ;;  %v2118_v52 = vadd.f32 %v3883_v9, %v2082_v7 }
 0x16e   : > { %v1411_v13 = vpop.f32.mrf.mxu0 }
 0x16f   : > { %v2004_v22 = vpop.f32.mrf.mxu2  ;;  %v1487_v57 = vadd.f32 %v1408_v55, %v1189_v62  ;;  %v1709_v18 = vpop.f32.mrf.mxu1  ;;  %v2246_v28 = vmul.f32 %v2118_v52, %v2118_v52  ;;  %v3189_v62 = vld [vmem:[%s3584_s8 + $0x80] sm:$0xff] }
 0x171   : > { %v1785_v19 = vadd.f32 %v1706_v6, %v1487_v57  ;;  %2794 = vmatmul.msk.bf16.gmra.mxu3 %vm377_vm0, %v3134_v1  ;;  %2886 = vmatmul.msk.bf16.gmra.mxu0 %vm377_vm0, %v3152_v29  ;;  %v3135_v6 = vld [vmem:[%s3584_s8 + $0x68] sm:$0xff] }
 0x172   : > { %2978 = vmatmul.msk.bf16.gmra.mxu1 %vm377_vm0, %v3170_v15 }
 0x173   : > { %v2083_v30 = vadd.f32 %v2004_v22, %v1785_v19  ;;  %v3171_v22 = vld [vmem:[%s3584_s8 + $0x78] sm:$0xff] }
 0x174   : > { %3070 = vmatmul.msk.bf16.gmra.mxu2 %vm377_vm0, %v3188_v44  ;;  %v1113_v20 = vpop.f32.mrf.mxu3 }
 0x175   : > { %v2119_v27 = vadd.f32 %v3883_v9, %v2083_v30  ;;  %v1190_v39 = vadd.f32 %v1113_v20, %v3688_v59 }
 0x176   : > { %v1413_v33 = vpop.f32.mrf.mxu0 }
 0x177   : > { %v2007_v49 = vpop.f32.mrf.mxu2  ;;  %v3201_v36 = vpack.c.bf16 %v2119_v27, %v2118_v52  ;;  %v2214_v37 = vadd.f32 %v2119_v27, %v2118_v52  ;;  %v2247_v14 = vmul.f32 %v2119_v27, %v2119_v27  ;;  %v1488_v43 = vadd.f32 %v1411_v13, %v1190_v39  ;;  %v1711_v47 = vpop.f32.mrf.mxu1 }
 0x179   : > { %v2278_v40 = vadd.f32 %v2247_v14, %v2246_v28  ;;  %v1786_v53 = vadd.f32 %v1709_v18, %v1488_v43  ;;  %3202 = vst [vmem:[%s3898_s13] sm:$0xff] %v3201_v36  }
 0x17b   : > { %v2084_v50 = vadd.f32 %v2007_v49, %v1786_v53  ;;  %v3154_v53 = vld [vmem:[%s3584_s8 + $0x78] sm:$0xff] }
 0x17c   : > { %v1115_v59 = vpop.f32.mrf.mxu3 }
 0x17d   : > { %v2120_v51 = vadd.f32 %v3883_v9, %v2084_v50  ;;  %v1191_v55 = vadd.f32 %v1115_v59, %v3694_v3  ;;  %v3190_v59 = vld [vmem:[%s3584_s8 + $0x88] sm:$0xff] }
 0x17e   : > { %v1416_v48 = vpop.f32.mrf.mxu0 }
 0x17f   : > { %v2009_v61 = vpop.f32.mrf.mxu2  ;;  %v2215_v1 = vadd.f32 %v2214_v37, %v2120_v51  ;;  %v2248_v29 = vmul.f32 %v2120_v51, %v2120_v51  ;;  %v1489_v7 = vadd.f32 %v1413_v33, %v1191_v55  ;;  %v1714_v13 = vpop.f32.mrf.mxu1 }
 0x181   : > { %v2279_v44 = vadd.f32 %v2278_v40, %v2248_v29  ;;  %v1787_v15 = vadd.f32 %v1711_v47, %v1489_v7  ;;  %2795 = vmatmul.msk.bf16.gmra.mxu3 %vm377_vm0, %v3135_v6  ;;  %2887 = vmatmul.msk.bf16.gmra.mxu0 %vm377_vm0, %v3153_v56  ;;  %v3136_v40 = vld [vmem:[%s3584_s8 + $0x70] sm:$0xff] }
 0x182   : > { %2979 = vmatmul.msk.bf16.gmra.mxu1 %vm377_vm0, %v3171_v22 }
 0x183   : > { %v2085_v3 = vadd.f32 %v2009_v61, %v1787_v15 }
 0x184   : > { %3071 = vmatmul.msk.bf16.gmra.mxu2 %vm377_vm0, %v3189_v62  ;;  %v1118_v57 = vpop.f32.mrf.mxu3 }
 0x185   : > { %v2121_v18 = vadd.f32 %v3883_v9, %v2085_v3  ;;  %v1192_v19 = vadd.f32 %v1118_v57, %v3703_v10 }
 0x186   : > { %v1418_v30 = vpop.f32.mrf.mxu0 }
 0x187   : > { %v2012_v52 = vpop.f32.mrf.mxu2  ;;  %v3206_v20 = vpack.c.bf16 %v2121_v18, %v2120_v51  ;;  %v2216_v27 = vadd.f32 %v2215_v1, %v2121_v18  ;;  %v2249_v39 = vmul.f32 %v2121_v18, %v2121_v18  ;;  %v1490_v49 = vadd.f32 %v1416_v48, %v1192_v19  ;;  %v1716_v28 = vpop.f32.mrf.mxu1  ;;  %v3172_v51 = vld [vmem:[%s3584_s8 + $0x80] sm:$0xff] }
 0x189   : > { %v2280_v33 = vadd.f32 %v2279_v44, %v2249_v39  ;;  %v1788_v36 = vadd.f32 %v1714_v13, %v1490_v49  ;;  %3278 = vst [vmem:[%s3898_s13 + $0x8] sm:$0xff] %v3206_v20   ;;  %v3137_v49 = vld [vmem:[%s3584_s8 + $0x78] sm:$0xff] }
 0x18b   : > { %v2086_v37 = vadd.f32 %v2012_v52, %v1788_v36  ;;  %v3191_v36 = vld [vmem:[%s3584_s8 + $0x90] sm:$0xff] }
 0x18c   : > { %v1120_v14 = vpop.f32.mrf.mxu3 }
 0x18d   : > { %v2122_v43 = vadd.f32 %v3883_v9, %v2086_v37  ;;  %v1193_v10 = vadd.f32 %v1120_v14, %v3708_v17  ;;  %v3173_v37 = vld [vmem:[%s3584_s8 + $0x88] sm:$0xff] }
 0x18e   : > { %v1421_v50 = vpop.f32.mrf.mxu0 }
 0x18f   : > { %v2014_v47 = vpop.f32.mrf.mxu2  ;;  %v2217_v55 = vadd.f32 %v2216_v27, %v2122_v43  ;;  %v2250_v61 = vmul.f32 %v2122_v43, %v2122_v43  ;;  %v1491_v6 = vadd.f32 %v1418_v30, %v1193_v10  ;;  %v1719_v56 = vpop.f32.mrf.mxu1 }
 0x191   : > { %v2281_v48 = vadd.f32 %v2280_v33, %v2250_v61  ;;  %v1789_v62 = vadd.f32 %v1716_v28, %v1491_v6  ;;  %2796 = vmatmul.msk.bf16.gmra.mxu3 %vm377_vm0, %v3136_v40  ;;  %2888 = vmatmul.msk.bf16.gmra.mxu0 %vm377_vm0, %v3154_v53  ;;  %v3155_v28 = vld [vmem:[%s3584_s8 + $0x80] sm:$0xff] }
 0x192   : > { %2980 = vmatmul.msk.bf16.gmra.mxu1 %vm377_vm0, %v3172_v51 }
 0x193   : > { %v2087_v17 = vadd.f32 %v2014_v47, %v1789_v62 }
 0x194   : > { %3072 = vmatmul.msk.bf16.gmra.mxu2 %vm377_vm0, %v3190_v59  ;;  %v1123_v22 = vpop.f32.mrf.mxu3 }
 0x195   : > { %v2123_v1 = vadd.f32 %v3883_v9, %v2087_v17  ;;  %v1194_v29 = vadd.f32 %v1123_v22, %v3718_v25 }
 0x196   : > { %v1423_v13 = vpop.f32.mrf.mxu0 }
 0x197   : > { %v2017_v7 = vpop.f32.mrf.mxu2  ;;  %v3211_v44 = vpack.c.bf16 %v2123_v1, %v2122_v43  ;;  %v2218_v15 = vadd.f32 %v2217_v55, %v2123_v1  ;;  %v2251_v3 = vmul.f32 %v2123_v1, %v2123_v1  ;;  %v1492_v57 = vadd.f32 %v1421_v50, %v1194_v29  ;;  %v1721_v18 = vpop.f32.mrf.mxu1 }
 0x199   : > { %v2282_v19 = vadd.f32 %v2281_v48, %v2251_v3  ;;  %v1790_v52 = vadd.f32 %v1719_v56, %v1492_v57  ;;  %3279 = vst [vmem:[%s3898_s13 + $0x10] sm:$0xff] %v3211_v44   ;;  %v3156_v3 = vld [vmem:[%s3584_s8 + $0x88] sm:$0xff] }
 0x19b   : > { %v2088_v30 = vadd.f32 %v2017_v7, %v1790_v52 }
 0x19c   : > { %v1125_v20 = vpop.f32.mrf.mxu3 }
 0x19d   : > { %v2124_v27 = vadd.f32 %v3883_v9, %v2088_v30  ;;  %v1195_v25 = vadd.f32 %v1125_v20, %v3724_v32 }
 0x19e   : > { %v1426_v33 = vpop.f32.mrf.mxu0 }
 0x19f   : > { %v2019_v39 = vpop.f32.mrf.mxu2  ;;  %v2219_v14 = vadd.f32 %v2218_v15, %v2124_v27  ;;  %v2252_v43 = vmul.f32 %v2124_v27, %v2124_v27  ;;  %v1493_v10 = vadd.f32 %v1423_v13, %v1195_v25  ;;  %v1724_v47 = vpop.f32.mrf.mxu1  ;;  %v3138_v15 = vld [vmem:[%s3584_s8 + $0x80] sm:$0xff] }
 0x1a1   : > { %v2283_v40 = vadd.f32 %v2282_v19, %v2252_v43  ;;  %v1791_v53 = vadd.f32 %v1721_v18, %v1493_v10  ;;  %2797 = vmatmul.msk.bf16.gmra.mxu3 %vm377_vm0, %v3137_v49  ;;  %2889 = vmatmul.msk.bf16.gmra.mxu0 %vm377_vm0, %v3155_v28  ;;  %v3192_v18 = vld [vmem:[%s3584_s8 + $0x98] sm:$0xff]  ;;  %v3174_v19 = vld [vmem:[%s3584_s8 + $0x90] sm:$0xff] }
 0x1a2   : > { %2981 = vmatmul.msk.bf16.gmra.mxu1 %vm377_vm0, %v3173_v37 }
 0x1a3   : > { %v2089_v32 = vadd.f32 %v2019_v39, %v1791_v53 }
 0x1a4   : > { %3073 = vmatmul.msk.bf16.gmra.mxu2 %vm377_vm0, %v3191_v36  ;;  %v1128_v50 = vpop.f32.mrf.mxu3 }
 0x1a5   : > { %v2125_v59 = vadd.f32 %v3883_v9, %v2089_v32  ;;  %v1196_v51 = vadd.f32 %v1128_v50, %v3735_v41 }
 0x1a6   : > { %v1428_v61 = vpop.f32.mrf.mxu0 }
 0x1a7   : > { %v2022_v55 = vpop.f32.mrf.mxu2  ;;  %v3216_v6 = vpack.c.bf16 %v2125_v59, %v2124_v27  ;;  %v2220_v56 = vadd.f32 %v2219_v14, %v2125_v59  ;;  %v2253_v48 = vmul.f32 %v2125_v59, %v2125_v59  ;;  %v1494_v62 = vadd.f32 %v1426_v33, %v1196_v51  ;;  %v1726_v17 = vpop.f32.mrf.mxu1 }
 0x1a9   : > { %v2284_v22 = vadd.f32 %v2283_v40, %v2253_v48  ;;  %v1792_v1 = vadd.f32 %v1724_v47, %v1494_v62  ;;  %3280 = vst [vmem:[%s3898_s13 + $0x18] sm:$0xff] %v3216_v6   ;;  %v3157_v6 = vld [vmem:[%s3584_s8 + $0x90] sm:$0xff]  ;;  %v3193_v48 = vld [vmem:[%s3584_s8 + $0xa0] sm:$0xff]  ;;  %v3175_v62 = vld [vmem:[%s3584_s8 + $0x98] sm:$0xff] }
 0x1ab   : > { %v2090_v29 = vadd.f32 %v2022_v55, %v1792_v1 }
 0x1ac   : > { %v1130_v7 = vpop.f32.mrf.mxu3 }
 0x1ad   : > { %v2126_v13 = vadd.f32 %v3883_v9, %v2090_v29  ;;  %v1197_v41 = vadd.f32 %v1130_v7, %v3742_v54 }
 0x1ae   : > { %v1431_v57 = vpop.f32.mrf.mxu0 }
 0x1af   : > { %v2024_v44 = vpop.f32.mrf.mxu2  ;;  %v2221_v52 = vadd.f32 %v2220_v56, %v2126_v13  ;;  %v2254_v30 = vmul.f32 %v2126_v13, %v2126_v13  ;;  %v1495_v20 = vadd.f32 %v1428_v61, %v1197_v41  ;;  %v1729_v27 = vpop.f32.mrf.mxu1  ;;  %v3139_v61 = vld [vmem:[%s3584_s8 + $0x88] sm:$0xff] }
 0x1b1   : > { %v2285_v25 = vadd.f32 %v2284_v22, %v2254_v30  ;;  %v1793_v39 = vadd.f32 %v1726_v17, %v1495_v20  ;;  %2798 = vmatmul.msk.bf16.gmra.mxu3 %vm377_vm0, %v3138_v15  ;;  %2890 = vmatmul.msk.bf16.gmra.mxu0 %vm377_vm0, %v3156_v3 }
 0x1b2   : > { %2982 = vmatmul.msk.bf16.gmra.mxu1 %vm377_vm0, %v3174_v19 }
 0x1b3   : > { %v2091_v54 = vadd.f32 %v2024_v44, %v1793_v39 }
 0x1b4   : > { %3074 = vmatmul.msk.bf16.gmra.mxu2 %vm377_vm0, %v3192_v18  ;;  %v1133_v49 = vpop.f32.mrf.mxu3 }
 0x1b5   : > { %v2127_v28 = vadd.f32 %v3883_v9, %v2091_v54  ;;  %v1198_v33 = vadd.f32 %v1133_v49, %v3753_v0 }
 0x1b6   : > { %v1433_v37 = vpop.f32.mrf.mxu0 }
 0x1b7   : > { %v2027_v36 = vpop.f32.mrf.mxu2  ;;  %v3221_v14 = vpack.c.bf16 %v2127_v28, %v2126_v13  ;;  %v2222_v43 = vadd.f32 %v2221_v52, %v2127_v28  ;;  %v2255_v10 = vmul.f32 %v2127_v28, %v2127_v28  ;;  %v1496_v47 = vadd.f32 %v1431_v57, %v1198_v33  ;;  %v1731_v40 = vpop.f32.mrf.mxu1  ;;  %v3140_v33 = vld [vmem:[%s3584_s8 + $0x90] sm:$0xff] }
 0x1b9   : > { %v2286_v53 = vadd.f32 %v2285_v25, %v2255_v10  ;;  %v1794_v32 = vadd.f32 %v1729_v27, %v1496_v47  ;;  %3281 = vst [vmem:[%s3898_s13 + $0x20] sm:$0xff] %v3221_v14   ;;  %v3194_v14 = vld [vmem:[%s3584_s8 + $0xa8] sm:$0xff] }
 0x1bb   : > { %v2092_v50 = vadd.f32 %v2027_v36, %v1794_v32  ;;  %v3158_v36 = vld [vmem:[%s3584_s8 + $0x98] sm:$0xff] }
 0x1bc   : > { %v1135_v59 = vpop.f32.mrf.mxu3 }
 0x1bd   : > { %v2128_v51 = vadd.f32 %v3883_v9, %v2092_v50  ;;  %v1199_v0 = vadd.f32 %v1135_v59, %v3760_v12 }
 0x1be   : > { %v1436_v56 = vpop.f32.mrf.mxu0 }
 0x1bf   : > { %v2029_v55 = vpop.f32.mrf.mxu2  ;;  %v2223_v17 = vadd.f32 %v2222_v43, %v2128_v51  ;;  %v2256_v22 = vmul.f32 %v2128_v51, %v2128_v51  ;;  %v1497_v1 = vadd.f32 %v1433_v37, %v1199_v0  ;;  %v1734_v29 = vpop.f32.mrf.mxu1  ;;  %v3176_v43 = vld [vmem:[%s3584_s8 + $0xa0] sm:$0xff]  ;;  %s2494_s8 = sshll.u32 %s3888_s11, 3 }
 0x1c0   : > { %s228_s6 = scalar_lea.vmem [#allocation4], %s2494_s8  ;;  %s235_s26 = scalar_lea.vmem [#allocation6], %s2494_s8 }
 0x1c1   : > { %v2287_v7 = vadd.f32 %v2286_v53, %v2256_v22  ;;  %v1795_v13 = vadd.f32 %v1731_v40, %v1497_v1  ;;  %2799 = vmatmul.msk.bf16.gmra.mxu3 %vm377_vm0, %v3139_v61  ;;  %2891 = vmatmul.msk.bf16.gmra.mxu0 %vm377_vm0, %v3157_v6  ;;  %s2350_s7 = sshll.u32 %s228_s6, 4  ;;  %s2364_s2 = sshll.u32 %s235_s26, 4  ;;  %s4038_s7 = int_to_ptr.vmem [resolvable:$true] %s2350_s7  ;;  %s4043_s2 = int_to_ptr.vmem [resolvable:$true] %s2364_s2 }
 0x1c2   : > { %2983 = vmatmul.msk.bf16.gmra.mxu1 %vm377_vm0, %v3175_v62 }
 0x1c3   : > { %v2093_v12 = vadd.f32 %v2029_v55, %v1795_v13 }
 0x1c4   : > { %3075 = vmatmul.msk.bf16.gmra.mxu2 %vm377_vm0, %v3193_v48  ;;  %v1138_v41 = vpop.f32.mrf.mxu3 }
 0x1c5   : > { %v2129_v44 = vadd.f32 %v3883_v9, %v2093_v12  ;;  %v1200_v15 = vadd.f32 %v1138_v41, %v3771_v21 }
 0x1c6   : > { %v1438_v57 = vpop.f32.mrf.mxu0 }
 0x1c7   : > { %v2032_v3 = vpop.f32.mrf.mxu2  ;;  %v3226_v18 = vpack.c.bf16 %v2129_v44, %v2128_v51  ;;  %v2224_v19 = vadd.f32 %v2223_v17, %v2129_v44  ;;  %v2257_v52 = vmul.f32 %v2129_v44, %v2129_v44  ;;  %v1498_v30 = vadd.f32 %v1436_v56, %v1200_v15  ;;  %v1736_v20 = vpop.f32.mrf.mxu1 }
 0x1c9   : > { %v2288_v27 = vadd.f32 %v2287_v7, %v2257_v52  ;;  %v1796_v25 = vadd.f32 %v1734_v29, %v1498_v30  ;;  %3282 = vst [vmem:[%s3898_s13 + $0x28] sm:$0xff] %v3226_v18  }
 0x1cb   : > { %v2094_v39 = vadd.f32 %v2032_v3, %v1796_v25 }
 0x1cc   : > { %v1140_v54 = vpop.f32.mrf.mxu3 }
 0x1cd   : > { %v2130_v49 = vadd.f32 %v3883_v9, %v2094_v39  ;;  %v1201_v21 = vadd.f32 %v1140_v54, %v3778_v34 }
 0x1ce   : > { %v1441_v37 = vpop.f32.mrf.mxu0 }
 0x1cf   : > { %v2034_v28 = vpop.f32.mrf.mxu2  ;;  %v2225_v10 = vadd.f32 %v2224_v19, %v2130_v49  ;;  %v2258_v47 = vmul.f32 %v2130_v49, %v2130_v49  ;;  %v1499_v40 = vadd.f32 %v1438_v57, %v1201_v21  ;;  %v1739_v53 = vpop.f32.mrf.mxu1 }
 0x1d1   : > { %v2289_v32 = vadd.f32 %v2288_v27, %v2258_v47  ;;  %v1797_v50 = vadd.f32 %v1736_v20, %v1499_v40  ;;  %2800 = vmatmul.msk.bf16.gmra.mxu3 %vm377_vm0, %v3140_v33  ;;  %2892 = vmatmul.msk.bf16.gmra.mxu0 %vm377_vm0, %v3158_v36 }
 0x1d2   : > { %2984 = vmatmul.msk.bf16.gmra.mxu1 %vm377_vm0, %v3176_v43 }
 0x1d3   : > { %v2095_v34 = vadd.f32 %v2034_v28, %v1797_v50 }
 0x1d4   : > { %3076 = vmatmul.msk.bf16.gmra.mxu2 %vm377_vm0, %v3194_v14  ;;  %v1143_v59 = vpop.f32.mrf.mxu3 }
 0x1d5   : > { %v2131_v51 = vadd.f32 %v3883_v9, %v2095_v34  ;;  %v1202_v0 = vadd.f32 %v1143_v59, %v3789_v45 }
 0x1d6   : > { %v1443_v61 = vpop.f32.mrf.mxu0 }
 0x1d7   : > { %v2037_v55 = vpop.f32.mrf.mxu2  ;;  %v3231_v6 = vpack.c.bf16 %v2131_v51, %v2130_v49  ;;  %v2226_v56 = vadd.f32 %v2225_v10, %v2131_v51  ;;  %v2259_v48 = vmul.f32 %v2131_v51, %v2131_v51  ;;  %v1500_v62 = vadd.f32 %v1441_v37, %v1202_v0  ;;  %v1741_v17 = vpop.f32.mrf.mxu1 }
 0x1d9   : > { %v2290_v22 = vadd.f32 %v2289_v32, %v2259_v48  ;;  %v1798_v1 = vadd.f32 %v1739_v53, %v1500_v62  ;;  %3283 = vst [vmem:[%s3898_s13 + $0x30] sm:$0xff] %v3231_v6  }
 0x1db   : > { %v2096_v29 = vadd.f32 %v2037_v55, %v1798_v1 }
 0x1dc   : > { %v1145_v7 = vpop.f32.mrf.mxu3 }
 0x1dd   : > { %v2132_v13 = vadd.f32 %v3883_v9, %v2096_v29  ;;  %v1203_v12 = vadd.f32 %v1145_v7, %v3796_v42 }
 0x1de   : > { %v1446_v44 = vpop.f32.mrf.mxu0 }
 0x1df   : > { %v2039_v41 = vpop.f32.mrf.mxu2  ;;  %v2227_v15 = vadd.f32 %v2226_v56, %v2132_v13  ;;  %v2260_v45 = vmul.f32 %v2132_v13, %v2132_v13  ;;  %v1501_v3 = vadd.f32 %v1443_v61, %v1203_v12  ;;  %v1744_v57 = vpop.f32.mrf.mxu1 }
 0x1e1   : > { %v2291_v18 = vadd.f32 %v2290_v22, %v2260_v45  ;;  %v1799_v19 = vadd.f32 %v1741_v17, %v1501_v3 }
 0x1e3   : > { %v2097_v52 = vadd.f32 %v2039_v41, %v1799_v19 }
 0x1e4   : > { %v1148_v30 = vpop.f32.mrf.mxu3 }
 0x1e5   : > { %v2133_v20 = vadd.f32 %v3883_v9, %v2097_v52  ;;  %v1204_v27 = vadd.f32 %v1148_v30, %v3807_v5 }
 0x1e6   : > { %v1448_v39 = vpop.f32.mrf.mxu0 }
 0x1e7   : > { %v2042_v25 = vpop.f32.mrf.mxu2  ;;  %v3236_v54 = vpack.c.bf16 %v2133_v20, %v2132_v13  ;;  %v2228_v49 = vadd.f32 %v2227_v15, %v2133_v20  ;;  %v2261_v42 = vmul.f32 %v2133_v20, %v2133_v20  ;;  %v1502_v21 = vadd.f32 %v1446_v44, %v1204_v27  ;;  %v1746_v28 = vpop.f32.mrf.mxu1 }
 0x1e9   : > { %v2292_v33 = vadd.f32 %v2291_v18, %v2261_v42  ;;  %v1800_v36 = vadd.f32 %v1744_v57, %v1502_v21  ;;  %3284 = vst [vmem:[%s3898_s13 + $0x38] sm:$0xff] %v3236_v54  }
 0x1eb   : > { %v2098_v37 = vadd.f32 %v2042_v25, %v1800_v36 }
 0x1ec   : > { %v1150_v14 = vpop.f32.mrf.mxu3 }
 0x1ed   : > { %v2134_v43 = vadd.f32 %v3883_v9, %v2098_v37  ;;  %v1205_v10 = vadd.f32 %v1150_v14, %v3814_v63 }
 0x1ee   : > { %v1451_v40 = vpop.f32.mrf.mxu0 }
 0x1ef   : > { %v2044_v47 = vpop.f32.mrf.mxu2  ;;  %v2229_v53 = vadd.f32 %v2228_v49, %v2134_v43  ;;  %v2262_v5 = vmul.f32 %v2134_v43, %v2134_v43  ;;  %v1503_v32 = vadd.f32 %v1448_v39, %v1205_v10  ;;  %v1749_v50 = vpop.f32.mrf.mxu1 }
 0x1f1   : > { %v2293_v34 = vadd.f32 %v2292_v33, %v2262_v5  ;;  %v1801_v59 = vadd.f32 %v1746_v28, %v1503_v32 }
 0x1f3   : > { %v2099_v51 = vadd.f32 %v2044_v47, %v1801_v59 }
 0x1f4   : > { %v1153_v0 = vpop.f32.mrf.mxu3 }
 0x1f5   : > { %v2135_v55 = vadd.f32 %v3883_v9, %v2099_v51  ;;  %v1206_v61 = vadd.f32 %v1153_v0, %v3825_v31 }
 0x1f6   : > { %v1453_v56 = vpop.f32.mrf.mxu0 }
 0x1f7   : > { %v2047_v6 = vpop.f32.mrf.mxu2  ;;  %v3241_v48 = vpack.c.bf16 %v2135_v55, %v2134_v43  ;;  %v2230_v62 = vadd.f32 %v2229_v53, %v2135_v55  ;;  %v2263_v63 = vmul.f32 %v2135_v55, %v2135_v55  ;;  %v1504_v17 = vadd.f32 %v1451_v40, %v1206_v61  ;;  %v1751_v22 = vpop.f32.mrf.mxu1 }
 0x1f9   : > { %v2294_v1 = vadd.f32 %v2293_v34, %v2263_v63  ;;  %v1802_v29 = vadd.f32 %v1749_v50, %v1504_v17  ;;  %3285 = vst [vmem:[%s3898_s13 + $0x40] sm:$0xff] %v3241_v48  }
 0x1fb   : > { %v2100_v7 = vadd.f32 %v2047_v6, %v1802_v29 }
 0x1fc   : > { %v1155_v13 = vpop.f32.mrf.mxu3 }
 0x1fd   : > { %v2136_v12 = vadd.f32 %v3883_v9, %v2100_v7  ;;  %v1207_v41 = vadd.f32 %v1155_v13, %v3832_v46 }
 0x1fe   : > { %v1456_v15 = vpop.f32.mrf.mxu0 }
 0x1ff   : > { %v2049_v44 = vpop.f32.mrf.mxu2  ;;  %v2231_v45 = vadd.f32 %v2230_v62, %v2136_v12  ;;  %v2264_v31 = vmul.f32 %v2136_v12, %v2136_v12  ;;  %v1505_v3 = vadd.f32 %v1453_v56, %v1207_v41  ;;  %v1754_v57 = vpop.f32.mrf.mxu1 }
 0x201   : > { %v2295_v18 = vadd.f32 %v2294_v1, %v2264_v31  ;;  %v1803_v19 = vadd.f32 %v1751_v22, %v1505_v3 }
 0x203   : > { %v2101_v52 = vadd.f32 %v2049_v44, %v1803_v19 }
 0x204   : > { %v1158_v30 = vpop.f32.mrf.mxu3 }
 0x205   : > { %v2137_v20 = vadd.f32 %v3883_v9, %v2101_v52  ;;  %v1208_v27 = vadd.f32 %v1158_v30, %v3843_v60 }
 0x206   : > { %v1458_v39 = vpop.f32.mrf.mxu0 }
 0x207   : > { %v2052_v25 = vpop.f32.mrf.mxu2  ;;  %v3246_v54 = vpack.c.bf16 %v2137_v20, %v2136_v12  ;;  %v2232_v49 = vadd.f32 %v2231_v45, %v2137_v20  ;;  %v2265_v46 = vmul.f32 %v2137_v20, %v2137_v20  ;;  %v1506_v42 = vadd.f32 %v1456_v15, %v1208_v27  ;;  %v1756_v21 = vpop.f32.mrf.mxu1 }
 0x209   : > { %v2296_v28 = vadd.f32 %v2295_v18, %v2265_v46  ;;  %v1804_v33 = vadd.f32 %v1754_v57, %v1506_v42  ;;  %3286 = vst [vmem:[%s3898_s13 + $0x48] sm:$0xff] %v3246_v54  }
 0x20b   : > { %v2102_v36 = vadd.f32 %v2052_v25, %v1804_v33 }
 0x20c   : > { %v1160_v37 = vpop.f32.mrf.mxu3 }
 0x20d   : > { %v2138_v14 = vadd.f32 %v3883_v9, %v2102_v36  ;;  %v1209_v43 = vadd.f32 %v1160_v37, %v3850_v11 }
 0x20e   : > { %v1461_v47 = vpop.f32.mrf.mxu0 }
 0x20f   : > { %v2054_v10 = vpop.f32.mrf.mxu2  ;;  %v2233_v40 = vadd.f32 %v2232_v49, %v2138_v14  ;;  %v2266_v60 = vmul.f32 %v2138_v14, %v2138_v14  ;;  %v1507_v53 = vadd.f32 %v1458_v39, %v1209_v43  ;;  %v1759_v5 = vpop.f32.mrf.mxu1 }
 0x211   : > { %v2297_v32 = vadd.f32 %v2296_v28, %v2266_v60  ;;  %v1805_v50 = vadd.f32 %v1756_v21, %v1507_v53 }
 0x213   : > { %v2103_v34 = vadd.f32 %v2054_v10, %v1805_v50 }
 0x214   : > { %v1163_v59 = vpop.f32.mrf.mxu3 }
 0x215   : > { %v2139_v51 = vadd.f32 %v3883_v9, %v2103_v34  ;;  %v1210_v0 = vadd.f32 %v1163_v59, %v3861_v26 }
 0x216   : > { %v1463_v61 = vpop.f32.mrf.mxu0 }
 0x217   : > { %v2057_v55 = vpop.f32.mrf.mxu2  ;;  %v3251_v6 = vpack.c.bf16 %v2139_v51, %v2138_v14  ;;  %v2234_v56 = vadd.f32 %v2233_v40, %v2139_v51  ;;  %v2267_v11 = vmul.f32 %v2139_v51, %v2139_v51  ;;  %v1508_v48 = vadd.f32 %v1461_v47, %v1210_v0  ;;  %v1761_v62 = vpop.f32.mrf.mxu1 }
 0x219   : > { %v2298_v63 = vadd.f32 %v2297_v32, %v2267_v11  ;;  %v1806_v17 = vadd.f32 %v1759_v5, %v1508_v48  ;;  %3287 = vst [vmem:[%s3898_s13 + $0x50] sm:$0xff] %v3251_v6  }
 0x21b   : > { %v2104_v22 = vadd.f32 %v2057_v55, %v1806_v17 }
 0x21c   : > { %v1165_v1 = vpop.f32.mrf.mxu3 }
 0x21d   : > { %v2140_v29 = vadd.f32 %v3883_v9, %v2104_v22  ;;  %v1211_v7 = vadd.f32 %v1165_v1, %v3868_v8 }
 0x21e   : > { %v1466_v12 = vpop.f32.mrf.mxu0 }
 0x21f   : > { %v2059_v13 = vpop.f32.mrf.mxu2  ;;  %v2235_v41 = vadd.f32 %v2234_v56, %v2140_v29  ;;  %v2268_v26 = vmul.f32 %v2140_v29, %v2140_v29  ;;  %v1509_v44 = vadd.f32 %v1463_v61, %v1211_v7  ;;  %v1764_v15 = vpop.f32.mrf.mxu1 }
 0x221   : > { %v2299_v45 = vadd.f32 %v2298_v63, %v2268_v26  ;;  %v1807_v31 = vadd.f32 %v1761_v62, %v1509_v44 }
 0x223   : > { %v2105_v3 = vadd.f32 %v2059_v13, %v1807_v31 }
 0x224   : > { %v1168_v57 = vpop.f32.mrf.mxu3 }
 0x225   : > { %v2141_v18 = vadd.f32 %v3883_v9, %v2105_v3  ;;  %v1212_v19 = vadd.f32 %v1168_v57, %v3805_v4 }
 0x226   : > { %v1468_v30 = vpop.f32.mrf.mxu0 }
 0x227   : > { %v2062_v52 = vpop.f32.mrf.mxu2  ;;  %v3256_v20 = vpack.c.bf16 %v2141_v18, %v2140_v29  ;;  %v2236_v27 = vadd.f32 %v2235_v41, %v2141_v18  ;;  %v2269_v8 = vmul.f32 %v2141_v18, %v2141_v18  ;;  %v1510_v25 = vadd.f32 %v1466_v12, %v1212_v19  ;;  %v1766_v39 = vpop.f32.mrf.mxu1 }
 0x229   : > { %v2300_v54 = vadd.f32 %v2299_v45, %v2269_v8  ;;  %v1808_v49 = vadd.f32 %v1764_v15, %v1510_v25  ;;  %3288 = vst [vmem:[%s3898_s13 + $0x58] sm:$0xff] %v3256_v20  }
 0x22b   : > { %v2106_v46 = vadd.f32 %v2062_v52, %v1808_v49 }
 0x22c   : > { %v1170_v42 = vpop.f32.mrf.mxu3 }
 0x22d   : > { %v2142_v21 = vadd.f32 %v3883_v9, %v2106_v46  ;;  %v1213_v28 = vadd.f32 %v1170_v42, %v3810_v16 }
 0x22e   : > { %v1471_v36 = vpop.f32.mrf.mxu0 }
 0x22f   : > { %v2064_v33 = vpop.f32.mrf.mxu2  ;;  %v2237_v37 = vadd.f32 %v2236_v27, %v2142_v21  ;;  %v2270_v4 = vmul.f32 %v2142_v21, %v2142_v21  ;;  %v1511_v14 = vadd.f32 %v1468_v30, %v1213_v28  ;;  %v1769_v43 = vpop.f32.mrf.mxu1 }
 0x231   : > { %v2301_v10 = vadd.f32 %v2300_v54, %v2270_v4  ;;  %v1809_v47 = vadd.f32 %v1766_v39, %v1511_v14 }
 0x233   : > { %v2107_v40 = vadd.f32 %v2064_v33, %v1809_v47 }
 0x234   : > { %v1173_v60 = vpop.f32.mrf.mxu3 }
 0x235   : > { %v2143_v53 = vadd.f32 %v3883_v9, %v2107_v40  ;;  %v1214_v5 = vadd.f32 %v1173_v60, %v3823_v23 }
 0x236   : > { %v1473_v50 = vpop.f32.mrf.mxu0 }
 0x237   : > { %v2067_v32 = vpop.f32.mrf.mxu2  ;;  %v3261_v34 = vpack.c.bf16 %v2143_v53, %v2142_v21  ;;  %v2238_v59 = vadd.f32 %v2237_v37, %v2143_v53  ;;  %v2271_v16 = vmul.f32 %v2143_v53, %v2143_v53  ;;  %v1512_v51 = vadd.f32 %v1471_v36, %v1214_v5  ;;  %v1771_v0 = vpop.f32.mrf.mxu1 }
 0x239   : > { %v2302_v55 = vadd.f32 %v2301_v10, %v2271_v16  ;;  %v1810_v61 = vadd.f32 %v1769_v43, %v1512_v51  ;;  %3289 = vst [vmem:[%s3898_s13 + $0x60] sm:$0xff] %v3261_v34  }
 0x23b   : > { %v2108_v6 = vadd.f32 %v2067_v32, %v1810_v61 }
 0x23c   : > { %v1175_v56 = vpop.f32.mrf.mxu3 }
 0x23d   : > { %v2144_v11 = vadd.f32 %v3883_v9, %v2108_v6  ;;  %v1215_v48 = vadd.f32 %v1175_v56, %v3828_v38 }
 0x23e   : > { %v1476_v22 = vpop.f32.mrf.mxu0 }
 0x23f   : > { %v2069_v62 = vpop.f32.mrf.mxu2  ;;  %v2239_v63 = vadd.f32 %v2238_v59, %v2144_v11  ;;  %v2272_v17 = vmul.f32 %v2144_v11, %v2144_v11  ;;  %v1513_v23 = vadd.f32 %v1473_v50, %v1215_v48  ;;  %v1774_v7 = vpop.f32.mrf.mxu1 }
 0x241   : > { %v2303_v1 = vadd.f32 %v2302_v55, %v2272_v17  ;;  %v1811_v29 = vadd.f32 %v1771_v0, %v1513_v23 }
 0x243   : > { %v2109_v13 = vadd.f32 %v2069_v62, %v1811_v29 }
 0x244   : > { %v1178_v12 = vpop.f32.mrf.mxu3 }
 0x245   : > { %v2145_v41 = vadd.f32 %v3883_v9, %v2109_v13  ;;  %v1216_v26 = vadd.f32 %v1178_v12, %v3841_v58 }
 0x246   : > { %v1478_v18 = vpop.f32.mrf.mxu0 }
 0x247   : > { %v2072_v44 = vpop.f32.mrf.mxu2  ;;  %v3266_v15 = vpack.c.bf16 %v2145_v41, %v2144_v11  ;;  %v2240_v45 = vadd.f32 %v2239_v63, %v2145_v41  ;;  %v2273_v31 = vmul.f32 %v2145_v41, %v2145_v41  ;;  %v1514_v38 = vadd.f32 %v1476_v22, %v1216_v26  ;;  %v1776_v52 = vpop.f32.mrf.mxu1 }
 0x249   : > { %v2304_v3 = vadd.f32 %v2303_v1, %v2273_v31  ;;  %v1812_v57 = vadd.f32 %v1774_v7, %v1514_v38  ;;  %3290 = vst [vmem:[%s3898_s13 + $0x68] sm:$0xff] %v3266_v15  }
 0x24b   : > { %v2110_v19 = vadd.f32 %v2072_v44, %v1812_v57 }
 0x24c   : > { %v1180_v30 = vpop.f32.mrf.mxu3 }
 0x24d   : > { %v2146_v20 = vadd.f32 %v3883_v9, %v2110_v19  ;;  %v1217_v27 = vadd.f32 %v1180_v30, %v3846_v2 }
 0x24e   : > { %v1481_v42 = vpop.f32.mrf.mxu0 }
 0x24f   : > { %v2074_v8 = vpop.f32.mrf.mxu2  ;;  %v2241_v25 = vadd.f32 %v2240_v45, %v2146_v20  ;;  %v2274_v39 = vmul.f32 %v2146_v20, %v2146_v20  ;;  %v1515_v58 = vadd.f32 %v1478_v18, %v1217_v27  ;;  %v1779_v36 = vpop.f32.mrf.mxu1 }
 0x251   : > { %v2305_v54 = vadd.f32 %v2304_v3, %v2274_v39  ;;  %v1813_v49 = vadd.f32 %v1776_v52, %v1515_v58 }
 0x253   : > { %v2111_v46 = vadd.f32 %v2074_v8, %v1813_v49 }
 0x254   : > { %v1183_v21 = vpop.f32.mrf.mxu3 }
 0x255   : > { %v2147_v28 = vadd.f32 %v3883_v9, %v2111_v46  ;;  %v1218_v33 = vadd.f32 %v1183_v21, %v3859_v24 }
 0x256   : > { %v1483_v5 = vpop.f32.mrf.mxu0 }
 0x257   : > { %v3271_v37 = vpack.c.bf16 %v2147_v28, %v2146_v20  ;;  %v2242_v4 = vadd.f32 %v2241_v25, %v2147_v28  ;;  %v2275_v2 = vmul.f32 %v2147_v28, %v2147_v28  ;;  %v1516_v14 = vadd.f32 %v1481_v42, %v1218_v33  ;;  %v2077_v43 = vpop.f32.mrf.mxu2  ;;  %v1781_v59 = vpop.f32.mrf.mxu1 }
 0x259   : > { %v2306_v10 = vadd.f32 %v2305_v54, %v2275_v2  ;;  %v1814_v47 = vadd.f32 %v1779_v36, %v1516_v14  ;;  %3291 = vst [vmem:[%s3898_s13 + $0x70] sm:$0xff] %v3271_v37  }
 0x25b   : > { %v2112_v40 = vadd.f32 %v2077_v43, %v1814_v47 }
 0x25c   : > { %v1185_v60 = vpop.f32.mrf.mxu3 }
 0x25d   : > { %v2148_v53 = vadd.f32 %v3883_v9, %v2112_v40  ;;  %v1219_v24 = vadd.f32 %v1185_v60, %v3864_v35 }
 0x25f   : > { %v2243_v32 = vadd.f32 %v2242_v4, %v2148_v53  ;;  %v2276_v50 = vmul.f32 %v2148_v53, %v2148_v53  ;;  %v1517_v34 = vadd.f32 %v1483_v5, %v1219_v24  ;;  %v2079_v0 = vpop.f32.mrf.mxu2 }
 0x261   : > { %v2307_v16 = vadd.f32 %v2306_v10, %v2276_v50  ;;  %v1815_v51 = vadd.f32 %v1781_v59, %v1517_v34 }
 0x263   : > { %v2113_v55 = vadd.f32 %v2079_v0, %v1815_v51 }
 0x265   : > { %v2149_v35 = vadd.f32 %v3883_v9, %v2113_v55 }
 0x267   : > { %v3276_v61 = vpack.c.bf16 %v2149_v35, %v2148_v53  ;;  %v2277_v6 = vmul.f32 %v2149_v35, %v2149_v35  ;;  %v2244_v56 = vadd.f32 %v2243_v32, %v2149_v35 }
 0x269   : > { %3292 = vst [vmem:[%s3898_s13 + $0x78] sm:$0xff] %v3276_v61   ;;  %v2308_v11 = vadd.f32 %v2307_v16, %v2277_v6  ;;  %s3372_s13 = scalar_lea.hbm %s4112_s4, 16 }
 0x26a   : > { %2245 = vst [vmem:[%s228_s6] sm:$0xff] %v2244_v56  ;;  %p3374_p1 = scmp.lt.s32.totalorder %s3372_s13, %s3368_s14 }
 0x26c   : > { %p3375_p2 = por %p3374_p1, %p3373_p0 }
 0x26e   : > { %p3376_p3 = pnand %p3375_p2, %p3371_p13 }
 0x270   : > { %3379 = shalt.err (!%p3376_p3)
}
 0x271   : > { %3301 = dma.vmem_to_hbm [thread:$0]  (%p3548_p5), %s4038_s7, 128, %s2353_s22, %s4047_s0   ;;  %2309 = vst [vmem:[%s235_s26] sm:$0xff] %v2308_v11 }
 0x272   : > { %s2311_s16 = scalar_lea.sflag [#allocation3], %s3888_s11  ;;  %s3394_s6 = sshra.s32 %s4041_s25, 4  ;;  %s3395_s6 = int_to_ptr.hbm [resolvable:$true] %s3394_s6 }
 0x273   : > { %s3396_s10 = scalar_lea.hbm %s3395_s6, 128  ;;  %s3400_s14 = scalar_lea.hbm %s4111_s3, 256 }
 0x274   : > { %p3397_p4 = scmp.ne.s32.totalorder %s3395_s6, %s3396_s10  ;;  %p3401_p9 = scmp.lt.s32.totalorder %s3395_s6, %s4111_s3 }
 0x275   : > { %p3402_p10 = scmp.lt.s32.totalorder %s3400_s14, %s3396_s10 }
 0x276   : > { %p3398_p7 = pnand %p3397_p4, %p3548_p5 }
 0x277   : > { %p3403_p11 = por %p3402_p10, %p3401_p9 }
 0x278   : > { %p3399_p8 = pneg %p3398_p7 }
 0x27a   : > { %p3404_p12 = pnand %p3403_p11, %p3399_p8 }
 0x27c   : > { %3407 = shalt.err (!%p3404_p12)
}
 0x27d   : > { %s3476_s11 = smov 64   ;;  %s3477_s7 = smov 4  }
 0x27e   : > { %3300 = dma.vmem_to_hbm [thread:$0]  (%p3548_p5), %s4036_s17, 2048, %s4041_s25, %s2311_s16, %s3476_s11, %s3476_s11, %s3477_s7  }
 0x27f   : > { %s3422_s22 = sshra.s32 %s4045_s9, 4  ;;  %s3428_s30 = scalar_lea.hbm %s4113_s5, 16  ;;  %s3423_s22 = int_to_ptr.hbm [resolvable:$true] %s3422_s22 }
 0x280   : > { %s3424_s26 = scalar_lea.hbm %s3423_s22, 8  ;;  %p3429_p2 = scmp.lt.s32.totalorder %s3423_s22, %s4113_s5 }
 0x281   : > { %p3425_p13 = scmp.ne.s32.totalorder %s3423_s22, %s3424_s26  ;;  %p3430_p3 = scmp.lt.s32.totalorder %s3428_s30, %s3424_s26 }
 0x283   : > { %p3426_p0 = pnand %p3425_p13, %p3548_p5  ;;  %p3431_p4 = por %p3430_p3, %p3429_p2 }
 0x285   : > { %p3427_p1 = pneg %p3426_p0 }
 0x287   : > { %p3432_p7 = pnand %p3431_p4, %p3427_p1 }
 0x289   : > { %3435 = shalt.err (!%p3432_p7)
}
 0x28a   : > { %3302 = dma.vmem_to_hbm [thread:$0]  (%p3548_p5), %s4043_s2, 128, %s4045_s9, %s4047_s0  }
 0x28b PF: > { %p3316_p8 = scmp.ge.s32.totalorder %s3474_s21, 2  ;;  %s2378_s17 = sand.u32 1, %s3462_s18  }
 0x28c   : > { %s2379_s25 = scalar_lea.sflag [#allocation3], %s2378_s17 }
 0x28d   : > { %p3307_p9 = pnand %p3316_p8, %p3552_p6 }
 0x28f   : > { %p3308_p10 = pneg %p3307_p9 }
 0x291   : > { %3453 = dma.done.wait (%p3308_p10), %s2379_s25, 2048  }
 0x292   : > { %3455 = vsyncadd (%p3308_p10), %s2379_s25, 4294965248  ;;  %s4123_s16 = sadd.s32 4294967294, %s3474_s21  }
 0x293   : > { %s2388_s12 = sand.u32 1, %s4123_s16  }
 0x294   : > { %s2389_s28 = scalar_lea.sflag [#allocation5], %s2388_s12 }
 0x295   : > { %3457 = dma.done.wait (%p3308_p10), %s2389_s28, 256  }
 0x296   : > { %3459 = vsyncadd (%p3308_p10), %s2389_s28, 4294967040  ;;  %p19_p5 = scmp.ge.s32.totalorder %s3533_s24, 4   ;;  %s4124_s18 = smov %s3466_s19 }
 0x297   : > { %s4125_s19 = smov %s3470_s20  ;;  %s4126_s20 = smov %s3546_s27 }
 0x298   : > { %s4127_s21 = smov %s3533_s24  ;;  %21 = sbr.rel (!%p19_p5) target bundleno = 9 (0x9), region = 105 }
 0x29d   :  { %2405 = vsyncpa [#allocation3], 1 }
 0x29e   :  { %2407 = vsyncpa [#allocation3 + $0x1], 1 }
 0x29f   :  { %2408 = vsyncpa [#allocation5], 1 }
 0x2a0   :  { %2410 = vsyncpa [#allocation5 + $0x1], 1 }

</bundles_post_ra>
